<compile_context>
chip_gen: v7x
topology: tpu7x:2x2x1
jax: 0.10.0
libtpu: 0.0.40
codegen_flags: <defaults>
</compile_context>

<pallas_src>
import functools
import math

import jax
import jax.numpy as jnp
from jax.experimental import pallas as pl
from jax.experimental.pallas import tpu as pltpu

# ----------------------- synthetic BERT config -----------------------
VOCAB = 100
TYPE_VOCAB = 2
MAX_POS = 32
HIDDEN = 32
N_HEADS = 4
HEAD_DIM = HIDDEN // N_HEADS
INTERMEDIATE = 64
N_LAYERS = 2
NUM_LABELS = 5
MAX_SEQ_LEN = 8
LN_EPS = 1e-12


class ModelOutput:
    def __init__(self, logits, labels, loss=None):
        self.logits = logits
        self.labels = labels
        self.loss = loss


# ----------------------- in-kernel helpers (f32 math) -----------------------
def _layernorm(x, g, b):
    mean = jnp.mean(x, axis=-1, keepdims=True)
    xc = x - mean
    var = jnp.mean(xc * xc, axis=-1, keepdims=True)
    inv = jax.lax.rsqrt(var + LN_EPS)
    return xc * inv * g + b


def _gelu(x):
    # TODO(synk): exact erf-GELU if Mosaic gains an erf lowering; tanh approx here.
    c = math.sqrt(2.0 / math.pi)
    return 0.5 * x * (1.0 + jnp.tanh(c * (x + 0.044715 * x * x * x)))


# ----------------------- the fully fused kernel -----------------------
def _bert_ner_kernel(x_ref, keybias_ref, lab_ref, eg_ref, eb_ref,
                     wqkv_ref, bqkv_ref, aow_ref, aob_ref, ln1g_ref, ln1b_ref,
                     iw_ref, ib_ref, ow_ref, ob_ref, ln2g_ref, ln2b_ref,
                     clswt_ref, clsb_ref,
                     preds_ref, loss_ref, *, batch, seq):
    M = batch * seq
    D = HEAD_DIM
    GS = N_HEADS * M                       # attention rows, ordered [head, batch, seq]

    # ---- embedding LayerNorm ----
    x = _layernorm(x_ref[...], eg_ref[...], eb_ref[...])                      # (M, H) f32

    # ---- additive attention bias, built once and reused by every layer ----
    # block-diagonal over (head, batch) groups + key-padding bias; kept in f32
    # (a -1e9 add in bf16 would destroy the scores).
    ri = jax.lax.broadcasted_iota(jnp.int32, (GS, GS), 0)
    ci = jax.lax.broadcasted_iota(jnp.int32, (GS, GS), 1)
    if seq & (seq - 1) == 0:               # power-of-two seq: use shifts, no int div
        sh = seq.bit_length() - 1
        same_grp = (ri >> sh) == (ci >> sh)
    else:
        same_grp = (ri // seq) == (ci // seq)
    bias = jnp.where(same_grp, 0.0, -1e9) + keybias_ref[...]                  # (GS, GS)

    # ---- encoder layers, statically unrolled ----
    for l in range(N_LAYERS):
        xb = x.astype(jnp.bfloat16)
        # fused QKV projection; 1/sqrt(head_dim) pre-folded into the Q columns.
        qkv = jnp.dot(xb, wqkv_ref[l],
                      preferred_element_type=jnp.float32) + bqkv_ref[l]       # (M, 3H)

        # rearrange to (N_HEADS*M, D) with rows ordered [head, batch, seq].
        q64 = jnp.concatenate(
            [qkv[:, h * D:(h + 1) * D] for h in range(N_HEADS)], axis=0)
        k64 = jnp.concatenate(
            [qkv[:, HIDDEN + h * D:HIDDEN + (h + 1) * D] for h in range(N_HEADS)], axis=0)
        v64 = jnp.concatenate(
            [qkv[:, 2 * HIDDEN + h * D:2 * HIDDEN + (h + 1) * D] for h in range(N_HEADS)], axis=0)

        # one block-diagonal score matmul + one softmax for all (batch, head) pairs.
        s = jax.lax.dot_general(q64.astype(jnp.bfloat16), k64.astype(jnp.bfloat16),
                                (((1,), (1,)), ((), ())),
                                preferred_element_type=jnp.float32) + bias    # (GS, GS)
        m = jnp.max(s, axis=-1, keepdims=True)
        p = jnp.exp(s - m)
        p = p / jnp.sum(p, axis=-1, keepdims=True)
        ctx64 = jnp.dot(p.astype(jnp.bfloat16), v64.astype(jnp.bfloat16),
                        preferred_element_type=jnp.float32)                   # (GS, D)
        # back to (M, H) with columns ordered [head, d].
        ctx = jnp.concatenate(
            [ctx64[h * M:(h + 1) * M, :] for h in range(N_HEADS)], axis=1)

        attn_out = jnp.dot(ctx.astype(jnp.bfloat16), aow_ref[l],
                           preferred_element_type=jnp.float32) + aob_ref[l]
        x1 = _layernorm(attn_out + x, ln1g_ref[l], ln1b_ref[l])

        inter = _gelu(jnp.dot(x1.astype(jnp.bfloat16), iw_ref[l],
                              preferred_element_type=jnp.float32) + ib_ref[l])
        ffn = jnp.dot(inter.astype(jnp.bfloat16), ow_ref[l],
                      preferred_element_type=jnp.float32) + ob_ref[l]
        x = _layernorm(ffn + x1, ln2g_ref[l], ln2b_ref[l])

    # ---- classifier + argmax + cross-entropy (transposed, lane-dense layout) ----
    logits_t = jax.lax.dot_general(clswt_ref[...], x.astype(jnp.bfloat16),
                                   (((1,), (1,)), ((), ())),
                                   preferred_element_type=jnp.float32) + clsb_ref[...]  # (L, M)
    mx = jnp.max(logits_t, axis=0, keepdims=True)                             # (1, M)
    rows = jax.lax.broadcasted_iota(jnp.int32, logits_t.shape, 0)
    rows_f = rows.astype(jnp.float32)
    # argmax(softmax(x)) == argmax(x): softmax dropped entirely.
    preds = jnp.min(jnp.where(logits_t == mx, rows_f, float(NUM_LABELS)),
                    axis=0, keepdims=True)                                    # (1, M)
    preds_ref[...] = preds.astype(jnp.int32)

    # cross-entropy with ignore_index = -100 (mean over valid tokens).
    labels = lab_ref[...]                                                     # (1, M) int32
    lse = jnp.log(jnp.sum(jnp.exp(logits_t - mx), axis=0, keepdims=True)) + mx
    ll = jnp.sum(jnp.where(rows == labels, logits_t, 0.0), axis=0, keepdims=True)
    valid = (labels != -100).astype(jnp.float32)
    num = jnp.sum((lse - ll) * valid, axis=1, keepdims=True)                  # (1, 1)
    den = jnp.maximum(jnp.sum(valid, axis=1, keepdims=True), 1.0)
    loss_ref[0, 0] = (num / den)[0, 0]


def bert_ner_fused(x_emb, key_bias, labels_row, params, batch, seq):
    M = batch * seq
    st = params["stacked"]
    vmem = pl.BlockSpec(memory_space=pltpu.MemorySpace.VMEM)
    smem = pl.BlockSpec(memory_space=pltpu.MemorySpace.SMEM)
    preds, loss = pl.pallas_call(
        functools.partial(_bert_ner_kernel, batch=batch, seq=seq),
        out_shape=(jax.ShapeDtypeStruct((1, M), jnp.int32),       # lane-dense preds row
                   jax.ShapeDtypeStruct((1, 1), jnp.float32)),    # scalar loss (SMEM)
        in_specs=[vmem] * 19,
        out_specs=(vmem, smem),
    )(x_emb, key_bias, labels_row,
      params["emb_ln_g"].reshape(1, HIDDEN), params["emb_ln_b"].reshape(1, HIDDEN),
      st["wqkv"], st["bqkv"], st["ao_w"], st["ao_b"], st["ln1_g"], st["ln1_b"],
      st["i_w"], st["i_b"], st["o_w"], st["o_b"], st["ln2_g"], st["ln2_b"],
      params["cls_wt"], params["cls_b"].reshape(NUM_LABELS, 1))
    return preds, loss


# ----------------------- parameter construction -----------------------
def init_params(key):
    keys = iter(jax.random.split(key, 32))

    def nrm(shape):
        return jax.random.normal(next(keys), shape, jnp.float32) * 0.02

    layers = []
    for _ in range(N_LAYERS):
        layers.append(dict(
            q_w=nrm((HIDDEN, HIDDEN)), q_b=jnp.zeros((HIDDEN,), jnp.float32),
            k_w=nrm((HIDDEN, HIDDEN)), k_b=jnp.zeros((HIDDEN,), jnp.float32),
            v_w=nrm((HIDDEN, HIDDEN)), v_b=jnp.zeros((HIDDEN,), jnp.float32),
            ao_w=nrm((HIDDEN, HIDDEN)), ao_b=jnp.zeros((HIDDEN,), jnp.float32),
            ln1_g=jnp.ones((HIDDEN,), jnp.float32), ln1_b=jnp.zeros((HIDDEN,), jnp.float32),
            i_w=nrm((HIDDEN, INTERMEDIATE)), i_b=jnp.zeros((INTERMEDIATE,), jnp.float32),
            o_w=nrm((INTERMEDIATE, HIDDEN)), o_b=jnp.zeros((HIDDEN,), jnp.float32),
            ln2_g=jnp.ones((HIDDEN,), jnp.float32), ln2_b=jnp.zeros((HIDDEN,), jnp.float32),
        ))

    # Stack per-layer weights with a leading layer dim; concat QKV and fold the
    # 1/sqrt(head_dim) attention scale into the Q weight + bias.  Matmul weights
    # are stored bf16 (f32 accumulation in-kernel); biases / LN params stay f32.
    scale = 1.0 / math.sqrt(HEAD_DIM)
    stacked = dict(
        wqkv=jnp.stack([jnp.concatenate(
            [l["q_w"] * scale, l["k_w"], l["v_w"]], axis=1) for l in layers]).astype(jnp.bfloat16),
        bqkv=jnp.stack([jnp.concatenate(
            [l["q_b"] * scale, l["k_b"], l["v_b"]])[None, :] for l in layers]),
        ao_w=jnp.stack([l["ao_w"] for l in layers]).astype(jnp.bfloat16),
        ao_b=jnp.stack([l["ao_b"][None, :] for l in layers]),
        ln1_g=jnp.stack([l["ln1_g"][None, :] for l in layers]),
        ln1_b=jnp.stack([l["ln1_b"][None, :] for l in layers]),
        i_w=jnp.stack([l["i_w"] for l in layers]).astype(jnp.bfloat16),
        i_b=jnp.stack([l["i_b"][None, :] for l in layers]),
        o_w=jnp.stack([l["o_w"] for l in layers]).astype(jnp.bfloat16),
        o_b=jnp.stack([l["o_b"][None, :] for l in layers]),
        ln2_g=jnp.stack([l["ln2_g"][None, :] for l in layers]),
        ln2_b=jnp.stack([l["ln2_b"][None, :] for l in layers]),
    )

    cls_w = nrm((HIDDEN, NUM_LABELS))
    return {
        "word_emb": nrm((VOCAB, HIDDEN)),
        "pos_emb": nrm((MAX_POS, HIDDEN)),
        "type_emb": nrm((TYPE_VOCAB, HIDDEN)),
        "emb_ln_g": jnp.ones((HIDDEN,), jnp.float32),
        "emb_ln_b": jnp.zeros((HIDDEN,), jnp.float32),
        "cls_wt": cls_w.T.astype(jnp.bfloat16),                    # (NUM_LABELS, HIDDEN)
        "cls_b": jnp.zeros((NUM_LABELS,), jnp.float32),
        "stacked": stacked,
    }


# ----------------------- jitted forward -----------------------
@jax.jit
def _forward_jit(params, input_ids, attention_mask, labels):
    B, S = input_ids.shape
    # TODO(synk): fold the embedding gather into the Pallas kernel (scalar-prefetch
    # ids + in-kernel row gather) once that path is settled; it stays as XLA glue.
    emb = (params["word_emb"][input_ids]
           + params["pos_emb"][:S][None, :, :]
           + params["type_emb"][0][None, None, :])
    x0 = emb.reshape(B * S, HIDDEN)

    # per-key additive mask bias, pre-expanded to the kernel's [head, batch, seq]
    # key layout (the block-diagonal part of the mask is built in-kernel).
    bias_bs = (1.0 - attention_mask.astype(jnp.float32)) * (-1e9)             # (B, S)
    key_bias = jnp.broadcast_to(bias_bs[None, :, :],
                                (N_HEADS, B, S)).reshape(1, N_HEADS * B * S)
    labels_row = labels.reshape(1, B * S).astype(jnp.int32)

    preds, loss = bert_ner_fused(x0, key_bias, labels_row, params, B, S)
    return preds.reshape(B, S), loss[0, 0]


def bert_ner_forward(params, input_ids, attention_mask, labels=None):
    lab = labels if labels is not None else jnp.zeros(input_ids.shape, jnp.int32)
    preds, loss = _forward_jit(params, input_ids, attention_mask, lab)
    flat_labels = labels.reshape(-1) if labels is not None else None
    # single host pull at the very end (matches torch's .tolist()).
    logits_list = jax.device_get(preds).tolist()
    return ModelOutput(logits_list, flat_labels, loss if labels is not None else None)


# ----------------------- main -----------------------
if __name__ == "__main__":
    key = jax.random.PRNGKey(0)
    pk, ik, lk = jax.random.split(key, 3)
    params = init_params(pk)

    B = 2
    input_ids = jax.random.randint(ik, (B, MAX_SEQ_LEN), 0, VOCAB, dtype=jnp.int32)
    attention_mask = jnp.ones((B, MAX_SEQ_LEN), jnp.float32).at[1, 6:].set(0.0)
    labels = jax.random.randint(lk, (B, MAX_SEQ_LEN), 0, NUM_LABELS, dtype=jnp.int32)

    out = bert_ner_forward(params, input_ids, attention_mask, labels)
    jax.block_until_ready(out.loss)
    assert isinstance(out.logits, list) and len(out.logits) == B
    assert len(out.logits[0]) == MAX_SEQ_LEN
    assert all(0 <= p < NUM_LABELS for row in out.logits for p in row)
    print("KERNEL_OK")
</pallas_src>

<mosaic_0001>
module attributes {stable_mosaic.version = 11 : i64} {
  func.func @_bert_ner_kernel(%arg0: memref<16x32xf32, #tpu.memory_space<vmem>>, %arg1: memref<1x64xf32, #tpu.memory_space<vmem>>, %arg2: memref<1x16xi32, #tpu.memory_space<vmem>>, %arg3: memref<1x32xf32, #tpu.memory_space<vmem>>, %arg4: memref<1x32xf32, #tpu.memory_space<vmem>>, %arg5: memref<2x32x96xbf16, #tpu.memory_space<vmem>>, %arg6: memref<2x1x96xf32, #tpu.memory_space<vmem>>, %arg7: memref<2x32x32xbf16, #tpu.memory_space<vmem>>, %arg8: memref<2x1x32xf32, #tpu.memory_space<vmem>>, %arg9: memref<2x1x32xf32, #tpu.memory_space<vmem>>, %arg10: memref<2x1x32xf32, #tpu.memory_space<vmem>>, %arg11: memref<2x32x64xbf16, #tpu.memory_space<vmem>>, %arg12: memref<2x1x64xf32, #tpu.memory_space<vmem>>, %arg13: memref<2x64x32xbf16, #tpu.memory_space<vmem>>, %arg14: memref<2x1x32xf32, #tpu.memory_space<vmem>>, %arg15: memref<2x1x32xf32, #tpu.memory_space<vmem>>, %arg16: memref<2x1x32xf32, #tpu.memory_space<vmem>>, %arg17: memref<5x32xbf16, #tpu.memory_space<vmem>>, %arg18: memref<5x1xf32, #tpu.memory_space<vmem>>, %arg19: memref<1x16xi32, #tpu.memory_space<vmem>>, %arg20: memref<1x1xf32, #tpu.memory_space<smem>>) attributes {dimension_semantics = [], scalar_prefetch = 0 : i64, scratch_operands = 0 : i64, tpu.core_type = #tpu.core_type<tc>} {
    %c0 = arith.constant 0 : index
    %c0_0 = arith.constant 0 : index
    %0 = vector.load %arg0[%c0, %c0_0] : memref<16x32xf32, #tpu.memory_space<vmem>>, vector<16x32xf32>
    %c0_1 = arith.constant 0 : index
    %c0_2 = arith.constant 0 : index
    %1 = vector.load %arg3[%c0_1, %c0_2] : memref<1x32xf32, #tpu.memory_space<vmem>>, vector<1x32xf32>
    %c0_3 = arith.constant 0 : index
    %c0_4 = arith.constant 0 : index
    %2 = vector.load %arg4[%c0_3, %c0_4] : memref<1x32xf32, #tpu.memory_space<vmem>>, vector<1x32xf32>
    %cst = arith.constant dense<0.000000e+00> : vector<16xf32>
    %3 = vector.multi_reduction <add>, %0, %cst [1] : vector<16x32xf32> to vector<16xf32>
    %4 = vector.shape_cast %3 : vector<16xf32> to vector<16x1xf32>
    %cst_5 = arith.constant 3.200000e+01 : f32
    %5 = vector.broadcast %cst_5 : f32 to vector<16x1xf32>
    %6 = arith.divf %4, %5 : vector<16x1xf32>
    %7 = vector.broadcast %6 : vector<16x1xf32> to vector<16x32xf32>
    %8 = arith.subf %0, %7 : vector<16x32xf32>
    %9 = arith.mulf %8, %8 : vector<16x32xf32>
    %cst_6 = arith.constant dense<0.000000e+00> : vector<16xf32>
    %10 = vector.multi_reduction <add>, %9, %cst_6 [1] : vector<16x32xf32> to vector<16xf32>
    %11 = vector.shape_cast %10 : vector<16xf32> to vector<16x1xf32>
    %cst_7 = arith.constant 3.200000e+01 : f32
    %12 = vector.broadcast %cst_7 : f32 to vector<16x1xf32>
    %13 = arith.divf %11, %12 : vector<16x1xf32>
    %cst_8 = arith.constant 9.99999996E-13 : f32
    %14 = vector.broadcast %cst_8 : f32 to vector<16x1xf32>
    %15 = arith.addf %13, %14 : vector<16x1xf32>
    %16 = math.rsqrt %15 : vector<16x1xf32>
    %17 = vector.broadcast %16 : vector<16x1xf32> to vector<16x32xf32>
    %18 = arith.mulf %8, %17 : vector<16x32xf32>
    %19 = vector.broadcast %1 : vector<1x32xf32> to vector<16x32xf32>
    %20 = arith.mulf %18, %19 : vector<16x32xf32>
    %21 = vector.broadcast %2 : vector<1x32xf32> to vector<16x32xf32>
    %22 = arith.addf %20, %21 : vector<16x32xf32>
    %23 = tpu.iota {dimensions = array<i32: 0>} : vector<64x64xi32>
    %24 = tpu.iota {dimensions = array<i32: 1>} : vector<64x64xi32>
    %c3_i32 = arith.constant 3 : i32
    %25 = vector.broadcast %c3_i32 : i32 to vector<64x64xi32>
    %26 = arith.shrsi %23, %25 : vector<64x64xi32>
    %c3_i32_9 = arith.constant 3 : i32
    %27 = vector.broadcast %c3_i32_9 : i32 to vector<64x64xi32>
    %28 = arith.shrsi %24, %27 : vector<64x64xi32>
    %29 = arith.cmpi eq, %26, %28 : vector<64x64xi32>
    %cst_10 = arith.constant 0.000000e+00 : f32
    %cst_11 = arith.constant -1.000000e+09 : f32
    %30 = vector.broadcast %cst_10 : f32 to vector<64x64xf32>
    %31 = vector.broadcast %cst_11 : f32 to vector<64x64xf32>
    %32 = arith.select %29, %30, %31 : vector<64x64xi1>, vector<64x64xf32>
    %c0_12 = arith.constant 0 : index
    %c0_13 = arith.constant 0 : index
    %33 = vector.load %arg1[%c0_12, %c0_13] : memref<1x64xf32, #tpu.memory_space<vmem>>, vector<1x64xf32>
    %34 = vector.broadcast %33 : vector<1x64xf32> to vector<64x64xf32>
    %35 = arith.addf %32, %34 : vector<64x64xf32>
    %36 = arith.truncf %22 : vector<16x32xf32> to vector<16x32xbf16>
    %c0_14 = arith.constant 0 : index
    %c0_15 = arith.constant 0 : index
    %c0_16 = arith.constant 0 : index
    %37 = vector.load %arg5[%c0_14, %c0_15, %c0_16] : memref<2x32x96xbf16, #tpu.memory_space<vmem>>, vector<1x32x96xbf16>
    %38 = vector.shape_cast %37 : vector<1x32x96xbf16> to vector<32x96xbf16>
    %cst_17 = arith.constant dense<0.000000e+00> : vector<16x96xf32>
    %39 = tpu.matmul %36, %38, %cst_17 {dimension_numbers = #tpu.dot_dimension_numbers<[1], [0], [0], [1], [0, 0, 1, 1], [], []>} : vector<16x32xbf16>, vector<32x96xbf16>, vector<16x96xf32> -> vector<16x96xf32>
    %c0_18 = arith.constant 0 : index
    %c0_19 = arith.constant 0 : index
    %c0_20 = arith.constant 0 : index
    %40 = vector.load %arg6[%c0_18, %c0_19, %c0_20] : memref<2x1x96xf32, #tpu.memory_space<vmem>>, vector<1x1x96xf32>
    %41 = vector.shape_cast %40 : vector<1x1x96xf32> to vector<1x96xf32>
    %42 = vector.broadcast %41 : vector<1x96xf32> to vector<16x96xf32>
    %43 = arith.addf %39, %42 : vector<16x96xf32>
    %44 = vector.extract_strided_slice %43 {offsets = [0, 0], sizes = [16, 8], strides = [1, 1]} : vector<16x96xf32> to vector<16x8xf32>
    %45 = vector.extract_strided_slice %43 {offsets = [0, 8], sizes = [16, 8], strides = [1, 1]} : vector<16x96xf32> to vector<16x8xf32>
    %46 = vector.extract_strided_slice %43 {offsets = [0, 16], sizes = [16, 8], strides = [1, 1]} : vector<16x96xf32> to vector<16x8xf32>
    %47 = vector.extract_strided_slice %43 {offsets = [0, 24], sizes = [16, 8], strides = [1, 1]} : vector<16x96xf32> to vector<16x8xf32>
    %48 = tpu.concatenate %44, %45, %46, %47 in 0 : vector<16x8xf32>, vector<16x8xf32>, vector<16x8xf32>, vector<16x8xf32> -> vector<64x8xf32>
    %49 = vector.extract_strided_slice %43 {offsets = [0, 32], sizes = [16, 8], strides = [1, 1]} : vector<16x96xf32> to vector<16x8xf32>
    %50 = vector.extract_strided_slice %43 {offsets = [0, 40], sizes = [16, 8], strides = [1, 1]} : vector<16x96xf32> to vector<16x8xf32>
    %51 = vector.extract_strided_slice %43 {offsets = [0, 48], sizes = [16, 8], strides = [1, 1]} : vector<16x96xf32> to vector<16x8xf32>
    %52 = vector.extract_strided_slice %43 {offsets = [0, 56], sizes = [16, 8], strides = [1, 1]} : vector<16x96xf32> to vector<16x8xf32>
    %53 = tpu.concatenate %49, %50, %51, %52 in 0 : vector<16x8xf32>, vector<16x8xf32>, vector<16x8xf32>, vector<16x8xf32> -> vector<64x8xf32>
    %54 = vector.extract_strided_slice %43 {offsets = [0, 64], sizes = [16, 8], strides = [1, 1]} : vector<16x96xf32> to vector<16x8xf32>
    %55 = vector.extract_strided_slice %43 {offsets = [0, 72], sizes = [16, 8], strides = [1, 1]} : vector<16x96xf32> to vector<16x8xf32>
    %56 = vector.extract_strided_slice %43 {offsets = [0, 80], sizes = [16, 8], strides = [1, 1]} : vector<16x96xf32> to vector<16x8xf32>
    %57 = vector.extract_strided_slice %43 {offsets = [0, 88], sizes = [16, 8], strides = [1, 1]} : vector<16x96xf32> to vector<16x8xf32>
    %58 = tpu.concatenate %54, %55, %56, %57 in 0 : vector<16x8xf32>, vector<16x8xf32>, vector<16x8xf32>, vector<16x8xf32> -> vector<64x8xf32>
    %59 = arith.truncf %48 : vector<64x8xf32> to vector<64x8xbf16>
    %60 = arith.truncf %53 : vector<64x8xf32> to vector<64x8xbf16>
    %cst_21 = arith.constant dense<0.000000e+00> : vector<64x64xf32>
    %61 = tpu.matmul %59, %60, %cst_21 {dimension_numbers = #tpu.dot_dimension_numbers<[1], [1], [0], [0], [0, 0, 1, 0], [], []>} : vector<64x8xbf16>, vector<64x8xbf16>, vector<64x64xf32> -> vector<64x64xf32>
    %62 = arith.addf %61, %35 : vector<64x64xf32>
    %cst_22 = arith.constant dense<0xFF800000> : vector<64xf32>
    %63 = vector.multi_reduction <maximumf>, %62, %cst_22 [1] : vector<64x64xf32> to vector<64xf32>
    %64 = vector.shape_cast %63 : vector<64xf32> to vector<64x1xf32>
    %65 = vector.broadcast %64 : vector<64x1xf32> to vector<64x64xf32>
    %66 = arith.subf %62, %65 : vector<64x64xf32>
    %67 = math.exp %66 : vector<64x64xf32>
    %cst_23 = arith.constant dense<0.000000e+00> : vector<64xf32>
    %68 = vector.multi_reduction <add>, %67, %cst_23 [1] : vector<64x64xf32> to vector<64xf32>
    %69 = vector.shape_cast %68 : vector<64xf32> to vector<64x1xf32>
    %70 = vector.broadcast %69 : vector<64x1xf32> to vector<64x64xf32>
    %71 = arith.divf %67, %70 : vector<64x64xf32>
    %72 = arith.truncf %71 : vector<64x64xf32> to vector<64x64xbf16>
    %73 = arith.truncf %58 : vector<64x8xf32> to vector<64x8xbf16>
    %cst_24 = arith.constant dense<0.000000e+00> : vector<64x8xf32>
    %74 = tpu.matmul %72, %73, %cst_24 {dimension_numbers = #tpu.dot_dimension_numbers<[1], [0], [0], [1], [0, 0, 1, 1], [], []>} : vector<64x64xbf16>, vector<64x8xbf16>, vector<64x8xf32> -> vector<64x8xf32>
    %75 = vector.extract_strided_slice %74 {offsets = [0, 0], sizes = [16, 8], strides = [1, 1]} : vector<64x8xf32> to vector<16x8xf32>
    %76 = vector.extract_strided_slice %74 {offsets = [16, 0], sizes = [16, 8], strides = [1, 1]} : vector<64x8xf32> to vector<16x8xf32>
    %77 = vector.extract_strided_slice %74 {offsets = [32, 0], sizes = [16, 8], strides = [1, 1]} : vector<64x8xf32> to vector<16x8xf32>
    %78 = vector.extract_strided_slice %74 {offsets = [48, 0], sizes = [16, 8], strides = [1, 1]} : vector<64x8xf32> to vector<16x8xf32>
    %79 = tpu.concatenate %75, %76, %77, %78 in 1 : vector<16x8xf32>, vector<16x8xf32>, vector<16x8xf32>, vector<16x8xf32> -> vector<16x32xf32>
    %80 = arith.truncf %79 : vector<16x32xf32> to vector<16x32xbf16>
    %c0_25 = arith.constant 0 : index
    %c0_26 = arith.constant 0 : index
    %c0_27 = arith.constant 0 : index
    %81 = vector.load %arg7[%c0_25, %c0_26, %c0_27] : memref<2x32x32xbf16, #tpu.memory_space<vmem>>, vector<1x32x32xbf16>
    %82 = vector.shape_cast %81 : vector<1x32x32xbf16> to vector<32x32xbf16>
    %cst_28 = arith.constant dense<0.000000e+00> : vector<16x32xf32>
    %83 = tpu.matmul %80, %82, %cst_28 {dimension_numbers = #tpu.dot_dimension_numbers<[1], [0], [0], [1], [0, 0, 1, 1], [], []>} : vector<16x32xbf16>, vector<32x32xbf16>, vector<16x32xf32> -> vector<16x32xf32>
    %c0_29 = arith.constant 0 : index
    %c0_30 = arith.constant 0 : index
    %c0_31 = arith.constant 0 : index
    %84 = vector.load %arg8[%c0_29, %c0_30, %c0_31] : memref<2x1x32xf32, #tpu.memory_space<vmem>>, vector<1x1x32xf32>
    %85 = vector.shape_cast %84 : vector<1x1x32xf32> to vector<1x32xf32>
    %86 = vector.broadcast %85 : vector<1x32xf32> to vector<16x32xf32>
    %87 = arith.addf %83, %86 : vector<16x32xf32>
    %88 = arith.addf %87, %22 : vector<16x32xf32>
    %c0_32 = arith.constant 0 : index
    %c0_33 = arith.constant 0 : index
    %c0_34 = arith.constant 0 : index
    %89 = vector.load %arg9[%c0_32, %c0_33, %c0_34] : memref<2x1x32xf32, #tpu.memory_space<vmem>>, vector<1x1x32xf32>
    %90 = vector.shape_cast %89 : vector<1x1x32xf32> to vector<1x32xf32>
    %c0_35 = arith.constant 0 : index
    %c0_36 = arith.constant 0 : index
    %c0_37 = arith.constant 0 : index
    %91 = vector.load %arg10[%c0_35, %c0_36, %c0_37] : memref<2x1x32xf32, #tpu.memory_space<vmem>>, vector<1x1x32xf32>
    %92 = vector.shape_cast %91 : vector<1x1x32xf32> to vector<1x32xf32>
    %cst_38 = arith.constant dense<0.000000e+00> : vector<16xf32>
    %93 = vector.multi_reduction <add>, %88, %cst_38 [1] : vector<16x32xf32> to vector<16xf32>
    %94 = vector.shape_cast %93 : vector<16xf32> to vector<16x1xf32>
    %cst_39 = arith.constant 3.200000e+01 : f32
    %95 = vector.broadcast %cst_39 : f32 to vector<16x1xf32>
    %96 = arith.divf %94, %95 : vector<16x1xf32>
    %97 = vector.broadcast %96 : vector<16x1xf32> to vector<16x32xf32>
    %98 = arith.subf %88, %97 : vector<16x32xf32>
    %99 = arith.mulf %98, %98 : vector<16x32xf32>
    %cst_40 = arith.constant dense<0.000000e+00> : vector<16xf32>
    %100 = vector.multi_reduction <add>, %99, %cst_40 [1] : vector<16x32xf32> to vector<16xf32>
    %101 = vector.shape_cast %100 : vector<16xf32> to vector<16x1xf32>
    %cst_41 = arith.constant 3.200000e+01 : f32
    %102 = vector.broadcast %cst_41 : f32 to vector<16x1xf32>
    %103 = arith.divf %101, %102 : vector<16x1xf32>
    %cst_42 = arith.constant 9.99999996E-13 : f32
    %104 = vector.broadcast %cst_42 : f32 to vector<16x1xf32>
    %105 = arith.addf %103, %104 : vector<16x1xf32>
    %106 = math.rsqrt %105 : vector<16x1xf32>
    %107 = vector.broadcast %106 : vector<16x1xf32> to vector<16x32xf32>
    %108 = arith.mulf %98, %107 : vector<16x32xf32>
    %109 = vector.broadcast %90 : vector<1x32xf32> to vector<16x32xf32>
    %110 = arith.mulf %108, %109 : vector<16x32xf32>
    %111 = vector.broadcast %92 : vector<1x32xf32> to vector<16x32xf32>
    %112 = arith.addf %110, %111 : vector<16x32xf32>
    %113 = arith.truncf %112 : vector<16x32xf32> to vector<16x32xbf16>
    %c0_43 = arith.constant 0 : index
    %c0_44 = arith.constant 0 : index
    %c0_45 = arith.constant 0 : index
    %114 = vector.load %arg11[%c0_43, %c0_44, %c0_45] : memref<2x32x64xbf16, #tpu.memory_space<vmem>>, vector<1x32x64xbf16>
    %115 = vector.shape_cast %114 : vector<1x32x64xbf16> to vector<32x64xbf16>
    %cst_46 = arith.constant dense<0.000000e+00> : vector<16x64xf32>
    %116 = tpu.matmul %113, %115, %cst_46 {dimension_numbers = #tpu.dot_dimension_numbers<[1], [0], [0], [1], [0, 0, 1, 1], [], []>} : vector<16x32xbf16>, vector<32x64xbf16>, vector<16x64xf32> -> vector<16x64xf32>
    %c0_47 = arith.constant 0 : index
    %c0_48 = arith.constant 0 : index
    %c0_49 = arith.constant 0 : index
    %117 = vector.load %arg12[%c0_47, %c0_48, %c0_49] : memref<2x1x64xf32, #tpu.memory_space<vmem>>, vector<1x1x64xf32>
    %118 = vector.shape_cast %117 : vector<1x1x64xf32> to vector<1x64xf32>
    %119 = vector.broadcast %118 : vector<1x64xf32> to vector<16x64xf32>
    %120 = arith.addf %116, %119 : vector<16x64xf32>
    %cst_50 = arith.constant 5.000000e-01 : f32
    %121 = vector.broadcast %cst_50 : f32 to vector<16x64xf32>
    %122 = arith.mulf %121, %120 : vector<16x64xf32>
    %cst_51 = arith.constant 4.471500e-02 : f32
    %123 = vector.broadcast %cst_51 : f32 to vector<16x64xf32>
    %124 = arith.mulf %123, %120 : vector<16x64xf32>
    %125 = arith.mulf %124, %120 : vector<16x64xf32>
    %126 = arith.mulf %125, %120 : vector<16x64xf32>
    %127 = arith.addf %120, %126 : vector<16x64xf32>
    %cst_52 = arith.constant 0.797884583 : f32
    %128 = vector.broadcast %cst_52 : f32 to vector<16x64xf32>
    %129 = arith.mulf %128, %127 : vector<16x64xf32>
    %130 = math.tanh %129 : vector<16x64xf32>
    %cst_53 = arith.constant 1.000000e+00 : f32
    %131 = vector.broadcast %cst_53 : f32 to vector<16x64xf32>
    %132 = arith.addf %131, %130 : vector<16x64xf32>
    %133 = arith.mulf %122, %132 : vector<16x64xf32>
    %134 = arith.truncf %133 : vector<16x64xf32> to vector<16x64xbf16>
    %c0_54 = arith.constant 0 : index
    %c0_55 = arith.constant 0 : index
    %c0_56 = arith.constant 0 : index
    %135 = vector.load %arg13[%c0_54, %c0_55, %c0_56] : memref<2x64x32xbf16, #tpu.memory_space<vmem>>, vector<1x64x32xbf16>
    %136 = vector.shape_cast %135 : vector<1x64x32xbf16> to vector<64x32xbf16>
    %cst_57 = arith.constant dense<0.000000e+00> : vector<16x32xf32>
    %137 = tpu.matmul %134, %136, %cst_57 {dimension_numbers = #tpu.dot_dimension_numbers<[1], [0], [0], [1], [0, 0, 1, 1], [], []>} : vector<16x64xbf16>, vector<64x32xbf16>, vector<16x32xf32> -> vector<16x32xf32>
    %c0_58 = arith.constant 0 : index
    %c0_59 = arith.constant 0 : index
    %c0_60 = arith.constant 0 : index
    %138 = vector.load %arg14[%c0_58, %c0_59, %c0_60] : memref<2x1x32xf32, #tpu.memory_space<vmem>>, vector<1x1x32xf32>
    %139 = vector.shape_cast %138 : vector<1x1x32xf32> to vector<1x32xf32>
    %140 = vector.broadcast %139 : vector<1x32xf32> to vector<16x32xf32>
    %141 = arith.addf %137, %140 : vector<16x32xf32>
    %142 = arith.addf %141, %112 : vector<16x32xf32>
    %c0_61 = arith.constant 0 : index
    %c0_62 = arith.constant 0 : index
    %c0_63 = arith.constant 0 : index
    %143 = vector.load %arg15[%c0_61, %c0_62, %c0_63] : memref<2x1x32xf32, #tpu.memory_space<vmem>>, vector<1x1x32xf32>
    %144 = vector.shape_cast %143 : vector<1x1x32xf32> to vector<1x32xf32>
    %c0_64 = arith.constant 0 : index
    %c0_65 = arith.constant 0 : index
    %c0_66 = arith.constant 0 : index
    %145 = vector.load %arg16[%c0_64, %c0_65, %c0_66] : memref<2x1x32xf32, #tpu.memory_space<vmem>>, vector<1x1x32xf32>
    %146 = vector.shape_cast %145 : vector<1x1x32xf32> to vector<1x32xf32>
    %cst_67 = arith.constant dense<0.000000e+00> : vector<16xf32>
    %147 = vector.multi_reduction <add>, %142, %cst_67 [1] : vector<16x32xf32> to vector<16xf32>
    %148 = vector.shape_cast %147 : vector<16xf32> to vector<16x1xf32>
    %cst_68 = arith.constant 3.200000e+01 : f32
    %149 = vector.broadcast %cst_68 : f32 to vector<16x1xf32>
    %150 = arith.divf %148, %149 : vector<16x1xf32>
    %151 = vector.broadcast %150 : vector<16x1xf32> to vector<16x32xf32>
    %152 = arith.subf %142, %151 : vector<16x32xf32>
    %153 = arith.mulf %152, %152 : vector<16x32xf32>
    %cst_69 = arith.constant dense<0.000000e+00> : vector<16xf32>
    %154 = vector.multi_reduction <add>, %153, %cst_69 [1] : vector<16x32xf32> to vector<16xf32>
    %155 = vector.shape_cast %154 : vector<16xf32> to vector<16x1xf32>
    %cst_70 = arith.constant 3.200000e+01 : f32
    %156 = vector.broadcast %cst_70 : f32 to vector<16x1xf32>
    %157 = arith.divf %155, %156 : vector<16x1xf32>
    %cst_71 = arith.constant 9.99999996E-13 : f32
    %158 = vector.broadcast %cst_71 : f32 to vector<16x1xf32>
    %159 = arith.addf %157, %158 : vector<16x1xf32>
    %160 = math.rsqrt %159 : vector<16x1xf32>
    %161 = vector.broadcast %160 : vector<16x1xf32> to vector<16x32xf32>
    %162 = arith.mulf %152, %161 : vector<16x32xf32>
    %163 = vector.broadcast %144 : vector<1x32xf32> to vector<16x32xf32>
    %164 = arith.mulf %162, %163 : vector<16x32xf32>
    %165 = vector.broadcast %146 : vector<1x32xf32> to vector<16x32xf32>
    %166 = arith.addf %164, %165 : vector<16x32xf32>
    %167 = arith.truncf %166 : vector<16x32xf32> to vector<16x32xbf16>
    %c1 = arith.constant 1 : index
    %c0_72 = arith.constant 0 : index
    %c0_73 = arith.constant 0 : index
    %168 = vector.load %arg5[%c1, %c0_72, %c0_73] : memref<2x32x96xbf16, #tpu.memory_space<vmem>>, vector<1x32x96xbf16>
    %169 = vector.shape_cast %168 : vector<1x32x96xbf16> to vector<32x96xbf16>
    %cst_74 = arith.constant dense<0.000000e+00> : vector<16x96xf32>
    %170 = tpu.matmul %167, %169, %cst_74 {dimension_numbers = #tpu.dot_dimension_numbers<[1], [0], [0], [1], [0, 0, 1, 1], [], []>} : vector<16x32xbf16>, vector<32x96xbf16>, vector<16x96xf32> -> vector<16x96xf32>
    %c1_75 = arith.constant 1 : index
    %c0_76 = arith.constant 0 : index
    %c0_77 = arith.constant 0 : index
    %171 = vector.load %arg6[%c1_75, %c0_76, %c0_77] : memref<2x1x96xf32, #tpu.memory_space<vmem>>, vector<1x1x96xf32>
    %172 = vector.shape_cast %171 : vector<1x1x96xf32> to vector<1x96xf32>
    %173 = vector.broadcast %172 : vector<1x96xf32> to vector<16x96xf32>
    %174 = arith.addf %170, %173 : vector<16x96xf32>
    %175 = vector.extract_strided_slice %174 {offsets = [0, 0], sizes = [16, 8], strides = [1, 1]} : vector<16x96xf32> to vector<16x8xf32>
    %176 = vector.extract_strided_slice %174 {offsets = [0, 8], sizes = [16, 8], strides = [1, 1]} : vector<16x96xf32> to vector<16x8xf32>
    %177 = vector.extract_strided_slice %174 {offsets = [0, 16], sizes = [16, 8], strides = [1, 1]} : vector<16x96xf32> to vector<16x8xf32>
    %178 = vector.extract_strided_slice %174 {offsets = [0, 24], sizes = [16, 8], strides = [1, 1]} : vector<16x96xf32> to vector<16x8xf32>
    %179 = tpu.concatenate %175, %176, %177, %178 in 0 : vector<16x8xf32>, vector<16x8xf32>, vector<16x8xf32>, vector<16x8xf32> -> vector<64x8xf32>
    %180 = vector.extract_strided_slice %174 {offsets = [0, 32], sizes = [16, 8], strides = [1, 1]} : vector<16x96xf32> to vector<16x8xf32>
    %181 = vector.extract_strided_slice %174 {offsets = [0, 40], sizes = [16, 8], strides = [1, 1]} : vector<16x96xf32> to vector<16x8xf32>
    %182 = vector.extract_strided_slice %174 {offsets = [0, 48], sizes = [16, 8], strides = [1, 1]} : vector<16x96xf32> to vector<16x8xf32>
    %183 = vector.extract_strided_slice %174 {offsets = [0, 56], sizes = [16, 8], strides = [1, 1]} : vector<16x96xf32> to vector<16x8xf32>
    %184 = tpu.concatenate %180, %181, %182, %183 in 0 : vector<16x8xf32>, vector<16x8xf32>, vector<16x8xf32>, vector<16x8xf32> -> vector<64x8xf32>
    %185 = vector.extract_strided_slice %174 {offsets = [0, 64], sizes = [16, 8], strides = [1, 1]} : vector<16x96xf32> to vector<16x8xf32>
    %186 = vector.extract_strided_slice %174 {offsets = [0, 72], sizes = [16, 8], strides = [1, 1]} : vector<16x96xf32> to vector<16x8xf32>
    %187 = vector.extract_strided_slice %174 {offsets = [0, 80], sizes = [16, 8], strides = [1, 1]} : vector<16x96xf32> to vector<16x8xf32>
    %188 = vector.extract_strided_slice %174 {offsets = [0, 88], sizes = [16, 8], strides = [1, 1]} : vector<16x96xf32> to vector<16x8xf32>
    %189 = tpu.concatenate %185, %186, %187, %188 in 0 : vector<16x8xf32>, vector<16x8xf32>, vector<16x8xf32>, vector<16x8xf32> -> vector<64x8xf32>
    %190 = arith.truncf %179 : vector<64x8xf32> to vector<64x8xbf16>
    %191 = arith.truncf %184 : vector<64x8xf32> to vector<64x8xbf16>
    %cst_78 = arith.constant dense<0.000000e+00> : vector<64x64xf32>
    %192 = tpu.matmul %190, %191, %cst_78 {dimension_numbers = #tpu.dot_dimension_numbers<[1], [1], [0], [0], [0, 0, 1, 0], [], []>} : vector<64x8xbf16>, vector<64x8xbf16>, vector<64x64xf32> -> vector<64x64xf32>
    %193 = arith.addf %192, %35 : vector<64x64xf32>
    %cst_79 = arith.constant dense<0xFF800000> : vector<64xf32>
    %194 = vector.multi_reduction <maximumf>, %193, %cst_79 [1] : vector<64x64xf32> to vector<64xf32>
    %195 = vector.shape_cast %194 : vector<64xf32> to vector<64x1xf32>
    %196 = vector.broadcast %195 : vector<64x1xf32> to vector<64x64xf32>
    %197 = arith.subf %193, %196 : vector<64x64xf32>
    %198 = math.exp %197 : vector<64x64xf32>
    %cst_80 = arith.constant dense<0.000000e+00> : vector<64xf32>
    %199 = vector.multi_reduction <add>, %198, %cst_80 [1] : vector<64x64xf32> to vector<64xf32>
    %200 = vector.shape_cast %199 : vector<64xf32> to vector<64x1xf32>
    %201 = vector.broadcast %200 : vector<64x1xf32> to vector<64x64xf32>
    %202 = arith.divf %198, %201 : vector<64x64xf32>
    %203 = arith.truncf %202 : vector<64x64xf32> to vector<64x64xbf16>
    %204 = arith.truncf %189 : vector<64x8xf32> to vector<64x8xbf16>
    %cst_81 = arith.constant dense<0.000000e+00> : vector<64x8xf32>
    %205 = tpu.matmul %203, %204, %cst_81 {dimension_numbers = #tpu.dot_dimension_numbers<[1], [0], [0], [1], [0, 0, 1, 1], [], []>} : vector<64x64xbf16>, vector<64x8xbf16>, vector<64x8xf32> -> vector<64x8xf32>
    %206 = vector.extract_strided_slice %205 {offsets = [0, 0], sizes = [16, 8], strides = [1, 1]} : vector<64x8xf32> to vector<16x8xf32>
    %207 = vector.extract_strided_slice %205 {offsets = [16, 0], sizes = [16, 8], strides = [1, 1]} : vector<64x8xf32> to vector<16x8xf32>
    %208 = vector.extract_strided_slice %205 {offsets = [32, 0], sizes = [16, 8], strides = [1, 1]} : vector<64x8xf32> to vector<16x8xf32>
    %209 = vector.extract_strided_slice %205 {offsets = [48, 0], sizes = [16, 8], strides = [1, 1]} : vector<64x8xf32> to vector<16x8xf32>
    %210 = tpu.concatenate %206, %207, %208, %209 in 1 : vector<16x8xf32>, vector<16x8xf32>, vector<16x8xf32>, vector<16x8xf32> -> vector<16x32xf32>
    %211 = arith.truncf %210 : vector<16x32xf32> to vector<16x32xbf16>
    %c1_82 = arith.constant 1 : index
    %c0_83 = arith.constant 0 : index
    %c0_84 = arith.constant 0 : index
    %212 = vector.load %arg7[%c1_82, %c0_83, %c0_84] : memref<2x32x32xbf16, #tpu.memory_space<vmem>>, vector<1x32x32xbf16>
    %213 = vector.shape_cast %212 : vector<1x32x32xbf16> to vector<32x32xbf16>
    %cst_85 = arith.constant dense<0.000000e+00> : vector<16x32xf32>
    %214 = tpu.matmul %211, %213, %cst_85 {dimension_numbers = #tpu.dot_dimension_numbers<[1], [0], [0], [1], [0, 0, 1, 1], [], []>} : vector<16x32xbf16>, vector<32x32xbf16>, vector<16x32xf32> -> vector<16x32xf32>
    %c1_86 = arith.constant 1 : index
    %c0_87 = arith.constant 0 : index
    %c0_88 = arith.constant 0 : index
    %215 = vector.load %arg8[%c1_86, %c0_87, %c0_88] : memref<2x1x32xf32, #tpu.memory_space<vmem>>, vector<1x1x32xf32>
    %216 = vector.shape_cast %215 : vector<1x1x32xf32> to vector<1x32xf32>
    %217 = vector.broadcast %216 : vector<1x32xf32> to vector<16x32xf32>
    %218 = arith.addf %214, %217 : vector<16x32xf32>
    %219 = arith.addf %218, %166 : vector<16x32xf32>
    %c1_89 = arith.constant 1 : index
    %c0_90 = arith.constant 0 : index
    %c0_91 = arith.constant 0 : index
    %220 = vector.load %arg9[%c1_89, %c0_90, %c0_91] : memref<2x1x32xf32, #tpu.memory_space<vmem>>, vector<1x1x32xf32>
    %221 = vector.shape_cast %220 : vector<1x1x32xf32> to vector<1x32xf32>
    %c1_92 = arith.constant 1 : index
    %c0_93 = arith.constant 0 : index
    %c0_94 = arith.constant 0 : index
    %222 = vector.load %arg10[%c1_92, %c0_93, %c0_94] : memref<2x1x32xf32, #tpu.memory_space<vmem>>, vector<1x1x32xf32>
    %223 = vector.shape_cast %222 : vector<1x1x32xf32> to vector<1x32xf32>
    %cst_95 = arith.constant dense<0.000000e+00> : vector<16xf32>
    %224 = vector.multi_reduction <add>, %219, %cst_95 [1] : vector<16x32xf32> to vector<16xf32>
    %225 = vector.shape_cast %224 : vector<16xf32> to vector<16x1xf32>
    %cst_96 = arith.constant 3.200000e+01 : f32
    %226 = vector.broadcast %cst_96 : f32 to vector<16x1xf32>
    %227 = arith.divf %225, %226 : vector<16x1xf32>
    %228 = vector.broadcast %227 : vector<16x1xf32> to vector<16x32xf32>
    %229 = arith.subf %219, %228 : vector<16x32xf32>
    %230 = arith.mulf %229, %229 : vector<16x32xf32>
    %cst_97 = arith.constant dense<0.000000e+00> : vector<16xf32>
    %231 = vector.multi_reduction <add>, %230, %cst_97 [1] : vector<16x32xf32> to vector<16xf32>
    %232 = vector.shape_cast %231 : vector<16xf32> to vector<16x1xf32>
    %cst_98 = arith.constant 3.200000e+01 : f32
    %233 = vector.broadcast %cst_98 : f32 to vector<16x1xf32>
    %234 = arith.divf %232, %233 : vector<16x1xf32>
    %cst_99 = arith.constant 9.99999996E-13 : f32
    %235 = vector.broadcast %cst_99 : f32 to vector<16x1xf32>
    %236 = arith.addf %234, %235 : vector<16x1xf32>
    %237 = math.rsqrt %236 : vector<16x1xf32>
    %238 = vector.broadcast %237 : vector<16x1xf32> to vector<16x32xf32>
    %239 = arith.mulf %229, %238 : vector<16x32xf32>
    %240 = vector.broadcast %221 : vector<1x32xf32> to vector<16x32xf32>
    %241 = arith.mulf %239, %240 : vector<16x32xf32>
    %242 = vector.broadcast %223 : vector<1x32xf32> to vector<16x32xf32>
    %243 = arith.addf %241, %242 : vector<16x32xf32>
    %244 = arith.truncf %243 : vector<16x32xf32> to vector<16x32xbf16>
    %c1_100 = arith.constant 1 : index
    %c0_101 = arith.constant 0 : index
    %c0_102 = arith.constant 0 : index
    %245 = vector.load %arg11[%c1_100, %c0_101, %c0_102] : memref<2x32x64xbf16, #tpu.memory_space<vmem>>, vector<1x32x64xbf16>
    %246 = vector.shape_cast %245 : vector<1x32x64xbf16> to vector<32x64xbf16>
    %cst_103 = arith.constant dense<0.000000e+00> : vector<16x64xf32>
    %247 = tpu.matmul %244, %246, %cst_103 {dimension_numbers = #tpu.dot_dimension_numbers<[1], [0], [0], [1], [0, 0, 1, 1], [], []>} : vector<16x32xbf16>, vector<32x64xbf16>, vector<16x64xf32> -> vector<16x64xf32>
    %c1_104 = arith.constant 1 : index
    %c0_105 = arith.constant 0 : index
    %c0_106 = arith.constant 0 : index
    %248 = vector.load %arg12[%c1_104, %c0_105, %c0_106] : memref<2x1x64xf32, #tpu.memory_space<vmem>>, vector<1x1x64xf32>
    %249 = vector.shape_cast %248 : vector<1x1x64xf32> to vector<1x64xf32>
    %250 = vector.broadcast %249 : vector<1x64xf32> to vector<16x64xf32>
    %251 = arith.addf %247, %250 : vector<16x64xf32>
    %cst_107 = arith.constant 5.000000e-01 : f32
    %252 = vector.broadcast %cst_107 : f32 to vector<16x64xf32>
    %253 = arith.mulf %252, %251 : vector<16x64xf32>
    %cst_108 = arith.constant 4.471500e-02 : f32
    %254 = vector.broadcast %cst_108 : f32 to vector<16x64xf32>
    %255 = arith.mulf %254, %251 : vector<16x64xf32>
    %256 = arith.mulf %255, %251 : vector<16x64xf32>
    %257 = arith.mulf %256, %251 : vector<16x64xf32>
    %258 = arith.addf %251, %257 : vector<16x64xf32>
    %cst_109 = arith.constant 0.797884583 : f32
    %259 = vector.broadcast %cst_109 : f32 to vector<16x64xf32>
    %260 = arith.mulf %259, %258 : vector<16x64xf32>
    %261 = math.tanh %260 : vector<16x64xf32>
    %cst_110 = arith.constant 1.000000e+00 : f32
    %262 = vector.broadcast %cst_110 : f32 to vector<16x64xf32>
    %263 = arith.addf %262, %261 : vector<16x64xf32>
    %264 = arith.mulf %253, %263 : vector<16x64xf32>
    %265 = arith.truncf %264 : vector<16x64xf32> to vector<16x64xbf16>
    %c1_111 = arith.constant 1 : index
    %c0_112 = arith.constant 0 : index
    %c0_113 = arith.constant 0 : index
    %266 = vector.load %arg13[%c1_111, %c0_112, %c0_113] : memref<2x64x32xbf16, #tpu.memory_space<vmem>>, vector<1x64x32xbf16>
    %267 = vector.shape_cast %266 : vector<1x64x32xbf16> to vector<64x32xbf16>
    %cst_114 = arith.constant dense<0.000000e+00> : vector<16x32xf32>
    %268 = tpu.matmul %265, %267, %cst_114 {dimension_numbers = #tpu.dot_dimension_numbers<[1], [0], [0], [1], [0, 0, 1, 1], [], []>} : vector<16x64xbf16>, vector<64x32xbf16>, vector<16x32xf32> -> vector<16x32xf32>
    %c1_115 = arith.constant 1 : index
    %c0_116 = arith.constant 0 : index
    %c0_117 = arith.constant 0 : index
    %269 = vector.load %arg14[%c1_115, %c0_116, %c0_117] : memref<2x1x32xf32, #tpu.memory_space<vmem>>, vector<1x1x32xf32>
    %270 = vector.shape_cast %269 : vector<1x1x32xf32> to vector<1x32xf32>
    %271 = vector.broadcast %270 : vector<1x32xf32> to vector<16x32xf32>
    %272 = arith.addf %268, %271 : vector<16x32xf32>
    %273 = arith.addf %272, %243 : vector<16x32xf32>
    %c1_118 = arith.constant 1 : index
    %c0_119 = arith.constant 0 : index
    %c0_120 = arith.constant 0 : index
    %274 = vector.load %arg15[%c1_118, %c0_119, %c0_120] : memref<2x1x32xf32, #tpu.memory_space<vmem>>, vector<1x1x32xf32>
    %275 = vector.shape_cast %274 : vector<1x1x32xf32> to vector<1x32xf32>
    %c1_121 = arith.constant 1 : index
    %c0_122 = arith.constant 0 : index
    %c0_123 = arith.constant 0 : index
    %276 = vector.load %arg16[%c1_121, %c0_122, %c0_123] : memref<2x1x32xf32, #tpu.memory_space<vmem>>, vector<1x1x32xf32>
    %277 = vector.shape_cast %276 : vector<1x1x32xf32> to vector<1x32xf32>
    %cst_124 = arith.constant dense<0.000000e+00> : vector<16xf32>
    %278 = vector.multi_reduction <add>, %273, %cst_124 [1] : vector<16x32xf32> to vector<16xf32>
    %279 = vector.shape_cast %278 : vector<16xf32> to vector<16x1xf32>
    %cst_125 = arith.constant 3.200000e+01 : f32
    %280 = vector.broadcast %cst_125 : f32 to vector<16x1xf32>
    %281 = arith.divf %279, %280 : vector<16x1xf32>
    %282 = vector.broadcast %281 : vector<16x1xf32> to vector<16x32xf32>
    %283 = arith.subf %273, %282 : vector<16x32xf32>
    %284 = arith.mulf %283, %283 : vector<16x32xf32>
    %cst_126 = arith.constant dense<0.000000e+00> : vector<16xf32>
    %285 = vector.multi_reduction <add>, %284, %cst_126 [1] : vector<16x32xf32> to vector<16xf32>
    %286 = vector.shape_cast %285 : vector<16xf32> to vector<16x1xf32>
    %cst_127 = arith.constant 3.200000e+01 : f32
    %287 = vector.broadcast %cst_127 : f32 to vector<16x1xf32>
    %288 = arith.divf %286, %287 : vector<16x1xf32>
    %cst_128 = arith.constant 9.99999996E-13 : f32
    %289 = vector.broadcast %cst_128 : f32 to vector<16x1xf32>
    %290 = arith.addf %288, %289 : vector<16x1xf32>
    %291 = math.rsqrt %290 : vector<16x1xf32>
    %292 = vector.broadcast %291 : vector<16x1xf32> to vector<16x32xf32>
    %293 = arith.mulf %283, %292 : vector<16x32xf32>
    %294 = vector.broadcast %275 : vector<1x32xf32> to vector<16x32xf32>
    %295 = arith.mulf %293, %294 : vector<16x32xf32>
    %296 = vector.broadcast %277 : vector<1x32xf32> to vector<16x32xf32>
    %297 = arith.addf %295, %296 : vector<16x32xf32>
    %c0_129 = arith.constant 0 : index
    %c0_130 = arith.constant 0 : index
    %298 = vector.load %arg17[%c0_129, %c0_130] : memref<5x32xbf16, #tpu.memory_space<vmem>>, vector<5x32xbf16>
    %299 = arith.truncf %297 : vector<16x32xf32> to vector<16x32xbf16>
    %cst_131 = arith.constant dense<0.000000e+00> : vector<5x16xf32>
    %300 = tpu.matmul %298, %299, %cst_131 {dimension_numbers = #tpu.dot_dimension_numbers<[1], [1], [0], [0], [0, 0, 1, 0], [], []>} : vector<5x32xbf16>, vector<16x32xbf16>, vector<5x16xf32> -> vector<5x16xf32>
    %c0_132 = arith.constant 0 : index
    %c0_133 = arith.constant 0 : index
    %301 = vector.load %arg18[%c0_132, %c0_133] : memref<5x1xf32, #tpu.memory_space<vmem>>, vector<5x1xf32>
    %302 = vector.broadcast %301 : vector<5x1xf32> to vector<5x16xf32>
    %303 = arith.addf %300, %302 : vector<5x16xf32>
    %cst_134 = arith.constant dense<0xFF800000> : vector<16xf32>
    %304 = vector.multi_reduction <maximumf>, %303, %cst_134 [0] : vector<5x16xf32> to vector<16xf32>
    %305 = vector.shape_cast %304 : vector<16xf32> to vector<1x16xf32>
    %306 = tpu.iota {dimensions = array<i32: 0>} : vector<5x16xi32>
    %307 = arith.sitofp %306 : vector<5x16xi32> to vector<5x16xf32>
    %308 = vector.broadcast %305 : vector<1x16xf32> to vector<5x16xf32>
    %309 = arith.cmpf oeq, %303, %308 : vector<5x16xf32>
    %cst_135 = arith.constant 5.000000e+00 : f32
    %310 = vector.broadcast %cst_135 : f32 to vector<5x16xf32>
    %311 = arith.select %309, %307, %310 : vector<5x16xi1>, vector<5x16xf32>
    %cst_136 = arith.constant dense<0x7F800000> : vector<16xf32>
    %312 = vector.multi_reduction <minimumf>, %311, %cst_136 [0] : vector<5x16xf32> to vector<16xf32>
    %313 = vector.shape_cast %312 : vector<16xf32> to vector<1x16xf32>
    %314 = arith.fptosi %313 : vector<1x16xf32> to vector<1x16xi32>
    %c0_137 = arith.constant 0 : index
    %c0_138 = arith.constant 0 : index
    %315 = vector.load %arg19[%c0_137, %c0_138] : memref<1x16xi32, #tpu.memory_space<vmem>>, vector<1x16xi32>
    tpu.vector_store %arg19[%c0_137, %c0_138], %314 {strides = array<i32>} : memref<1x16xi32, #tpu.memory_space<vmem>>, vector<1x16xi32>,
    %c0_139 = arith.constant 0 : index
    %c0_140 = arith.constant 0 : index
    %316 = vector.load %arg2[%c0_139, %c0_140] : memref<1x16xi32, #tpu.memory_space<vmem>>, vector<1x16xi32>
    %317 = vector.broadcast %305 : vector<1x16xf32> to vector<5x16xf32>
    %318 = arith.subf %303, %317 : vector<5x16xf32>
    %319 = math.exp %318 : vector<5x16xf32>
    %cst_141 = arith.constant dense<0.000000e+00> : vector<16xf32>
    %320 = vector.multi_reduction <add>, %319, %cst_141 [0] : vector<5x16xf32> to vector<16xf32>
    %321 = vector.shape_cast %320 : vector<16xf32> to vector<1x16xf32>
    %322 = math.log %321 : vector<1x16xf32>
    %323 = arith.addf %322, %305 : vector<1x16xf32>
    %324 = vector.broadcast %316 : vector<1x16xi32> to vector<5x16xi32>
    %325 = arith.cmpi eq, %306, %324 : vector<5x16xi32>
    %cst_142 = arith.constant 0.000000e+00 : f32
    %326 = vector.broadcast %cst_142 : f32 to vector<5x16xf32>
    %327 = arith.select %325, %303, %326 : vector<5x16xi1>, vector<5x16xf32>
    %cst_143 = arith.constant dense<0.000000e+00> : vector<16xf32>
    %328 = vector.multi_reduction <add>, %327, %cst_143 [0] : vector<5x16xf32> to vector<16xf32>
    %329 = vector.shape_cast %328 : vector<16xf32> to vector<1x16xf32>
    %c-100_i32 = arith.constant -100 : i32
    %330 = vector.broadcast %c-100_i32 : i32 to vector<1x16xi32>
    %331 = arith.cmpi ne, %316, %330 : vector<1x16xi32>
    %332 = arith.extui %331 : vector<1x16xi1> to vector<1x16xi32>
    %333 = arith.sitofp %332 : vector<1x16xi32> to vector<1x16xf32>
    %334 = arith.subf %323, %329 : vector<1x16xf32>
    %335 = arith.mulf %334, %333 : vector<1x16xf32>
    %cst_144 = arith.constant dense<0.000000e+00> : vector<1xf32>
    %336 = vector.multi_reduction <add>, %335, %cst_144 [1] : vector<1x16xf32> to vector<1xf32>
    %337 = vector.shape_cast %336 : vector<1xf32> to vector<1x1xf32>
    %cst_145 = arith.constant dense<0.000000e+00> : vector<1xf32>
    %338 = vector.multi_reduction <add>, %333, %cst_145 [1] : vector<1x16xf32> to vector<1xf32>
    %339 = vector.shape_cast %338 : vector<1xf32> to vector<1x1xf32>
    %cst_146 = arith.constant 1.000000e+00 : f32
    %340 = vector.broadcast %cst_146 : f32 to vector<1x1xf32>
    %341 = arith.maximumf %339, %340 : vector<1x1xf32>
    %342 = arith.divf %337, %341 : vector<1x1xf32>
    %343 = vector.extract %342[0, 0] : f32 from vector<1x1xf32>
    %c0_147 = arith.constant 0 : index
    %c0_148 = arith.constant 0 : index
    %344 = memref.load %arg20[%c0_147, %c0_148] : memref<1x1xf32, #tpu.memory_space<smem>>
    memref.store %343, %arg20[%c0_147, %c0_148] : memref<1x1xf32, #tpu.memory_space<smem>>
    return
  }
}

</mosaic_0001>

<bundles_post_ra>
// kernel: _forward_jit.1
= control target key start
LH: loop header
LB: loop body
LE: loop exit
PB: predicated region body
PF: predicated region fallthrough
CT: control target
= control target key end

     0   :  { %s2861_s0 = inlined_call_operand.vmem [shape: f32[16,32], index: 0, kind: input, shape index: {}]   ;;  %s2862_s1 = inlined_call_operand.vmem [shape: f32[1,64], index: 1, kind: input, shape index: {}]   ;;  %s2863_s2 = inlined_call_operand.vmem [shape: s32[1,16], index: 2, kind: input, shape index: {}]   ;;  %s2864_s3 = inlined_call_operand.vmem [shape: f32[1,32], index: 3, kind: input, shape index: {}]   ;;  %s2865_s4 = inlined_call_operand.vmem [shape: f32[1,32], index: 4, kind: input, shape index: {}]   ;;  %s2866_s5 = inlined_call_operand.vmem [shape: bf16[2,32,96], index: 5, kind: input, shape index: {}]   ;;  %s2867_s6 = inlined_call_operand.vmem [shape: f32[2,1,96], index: 6, kind: input, shape index: {}]   ;;  %s2868_s7 = inlined_call_operand.vmem [shape: bf16[2,32,32], index: 7, kind: input, shape index: {}]   ;;  %s2869_s8 = inlined_call_operand.vmem [shape: f32[2,1,32], index: 8, kind: input, shape index: {}]   ;;  %s2870_s9 = inlined_call_operand.vmem [shape: f32[2,1,32], index: 9, kind: input, shape index: {}]   ;;  %s2871_s10 = inlined_call_operand.vmem [shape: f32[2,1,32], index: 10, kind: input, shape index: {}]   ;;  %s2872_s11 = inlined_call_operand.vmem [shape: bf16[2,32,64], index: 11, kind: input, shape index: {}]   ;;  %s2873_s12 = inlined_call_operand.vmem [shape: f32[2,1,64], index: 12, kind: input, shape index: {}]   ;;  %s2874_s13 = inlined_call_operand.vmem [shape: bf16[2,64,32], index: 13, kind: input, shape index: {}]   ;;  %s2875_s14 = inlined_call_operand.vmem [shape: f32[2,1,32], index: 14, kind: input, shape index: {}]   ;;  %s2876_s15 = inlined_call_operand.vmem [shape: f32[2,1,32], index: 15, kind: input, shape index: {}]   ;;  %s2877_s16 = inlined_call_operand.vmem [shape: f32[2,1,32], index: 16, kind: input, shape index: {}]   ;;  %s2878_s17 = inlined_call_operand.vmem [shape: bf16[5,32], index: 17, kind: input, shape index: {}]   ;;  %s2879_s18 = inlined_call_operand.vmem [shape: f32[5,1], index: 18, kind: input, shape index: {}]   ;;  %s2880_s19 = inlined_call_operand.vmem [shape: s32[1,16], index: 19, kind: output, shape index: {0}]   ;;  %s2881_s20 = inlined_call_operand.hbm [shape: f32[1,1], index: 20, kind: output, shape index: {1}]  }
   0x1   :  { %2884 = sst [smem:[#allocation5_spill]] %s2861_s0 }
   0x2   :  { %2885 = sst [smem:[#allocation6_spill]] %s2862_s1 }
   0x3   :  { %2886 = sst [smem:[#allocation7_spill]] %s2863_s2 }
   0x4   :  { %2887 = sst [smem:[#allocation8_spill]] %s2864_s3 }
   0x5   :  { %2888 = sst [smem:[#allocation9_spill]] %s2865_s4 }
   0x6   :  { %s2889_s23 = sld [smem:[#allocation5_spill]]  ;;  %vm70_vm0 = vcmask 261120  }
   0xc   :  { %v66_v0 = vld [vmem:[%s2889_s23] sm:$0xff]  ;;  %v67_v1 = vld [vmem:[%s2889_s23 + $0x8] sm:$0xff] }
   0xd   :  { %v71_v2 = vsel %vm70_vm0, %v66_v0, 0.0  ;;  %v74_v3 = vsel %vm70_vm0, %v67_v1, 0.0 }
   0xe   :  { %72 = vadd.xlane.f32.xlu0 %v71_v2 }
  0x12   :  { %75 = vadd.xlane.f32.xlu0 %v74_v3 }
  0x13   :  { %26 = vsyncpa [#allocation3], 0  ;;  %v2168_v14 = vld [vmem:[%s2866_s5] sm:$0xff]   ;;  %v2298_v15 = vmov 0.0   ;;  %v2169_v16 = vld [vmem:[%s2866_s5 + $0x8] sm:$0xff]   ;;  %vm2299_vm1 = vmmov 0   ;;  %v114_v63 = vlaneseq }
  0x14   :  { %1940 = vmatprep.subr.bf16.mxu0 %v2298_v15  ;;  %1944 = vmatprep.mubr.msk.bf16.mxu0 %vm2299_vm1, %v2298_v15  ;;  %s2890_s29 = sld [smem:[#allocation8_spill]]  ;;  %s2891_s21 = sld [smem:[#allocation9_spill]]  ;;  %v1788_v34 = vld [vmem:[%s2867_s6] ss:$0 sm:$0xff]  ;;  %vm269_vm2 = vcmask 64512   ;;  %vm359_vm7 = vcmask 523264  }
  0x15   :  { %1941 = vmatpush3.bf16.msra.mxu0 %v2168_v14  ;;  %s2300_s23 = smov 112   ;;  %s2301_s24 = smov 120   ;;  %v124_v2 = vand.u32 127, %v114_v63  ;;  %vm567_vm12 = vcmask 130048   ;;  %vm570_vm13 = vcmask 195584   ;;  %vm1722_vm15 = vcmask 122880  }
  0x16   :  { %1942 = vmatprep.subr.bf16.mxu0 %v2298_v15  ;;  %s2302_s2 = smov 104   ;;  %s2303_s25 = smov 96  }
  0x17   :  { %s2892_s27 = sld [smem:[#allocation6_spill]]  ;;  %s2305_s28 = smov 64  }
  0x18   :  { %s2307_s1 = smov 24   ;;  %s2883_s22 = smov 16  }
  0x19   :  { %1943 = vmatpush3.bf16.msra.mxu0 %v2169_v16  ;;  %s2894_s3 = sld [smem:[#allocation7_spill]] }
  0x1a   :  { %v1785_v25 = vld [vmem:[%s2890_s29] ss:$0 sm:$0xff] }
  0x1b   :  { %v1786_v29 = vld [vmem:[%s2891_s21] ss:$0 sm:$0xff]  ;;  %s2306_s21 = smov 8  }
  0x9b   :  { %v73_v4 = vpop.xlane.xlu0 %72 }
  0x9c   :  { %v78_v5 = vmul.f32 0.03125, %v73_v4 }
  0x9e   :  { %v80_v6 = vsub.f32 %v66_v0, %v78_v5  ;;  %v2490_v0 = vshrl.u32 %v114_v63, 7  ;;  %v133_v5 = vshra.s32 %v124_v2, 3 }
  0x9f   :  { %v76_v7 = vpop.xlane.xlu0 %75 }
  0xa0   :  { %v79_v8 = vmul.f32 0.03125, %v76_v7  ;;  %v82_v9 = vmul.f32 %v80_v6, %v80_v6  ;;  %v116_v3 = vadd.s32 8, %v2490_v0  ;;  %v118_v7 = vadd.s32 24, %v2490_v0 }
  0xa1   :  { %v121_v14 = vadd.s32 48, %v2490_v0  ;;  %v120_v16 = vadd.s32 40, %v2490_v0 }
  0xa2   :  { %v81_v10 = vsub.f32 %v67_v1, %v79_v8  ;;  %v84_v11 = vsel %vm70_vm0, %v82_v9, 0.0  ;;  %v117_v1 = vadd.s32 16, %v2490_v0  ;;  %v126_v8 = vshra.s32 %v116_v3, 3 }
  0xa3   :  { %85 = vadd.xlane.f32.xlu1 %v84_v11  ;;  %v119_v9 = vadd.s32 32, %v2490_v0  ;;  %v2304_v11 = vmov -1e+09  }
  0xa4   :  { %v83_v12 = vmul.f32 %v81_v10, %v81_v10  ;;  %v127_v4 = vshra.s32 %v117_v1, 3  ;;  %vm135_vm5 = vcmp.eq.s32.totalorder %v126_v8, %v133_v5 }
  0xa6   :  { %v87_v13 = vsel %vm70_vm0, %v83_v12, 0.0  ;;  %vm136_vm3 = vcmp.eq.s32.totalorder %v127_v4, %v133_v5 }
  0xa7   :  { %88 = vadd.xlane.f32.xlu1 %v87_v13  ;;  %v144_v12 = vsel %vm136_vm3, 0.0, %v2304_v11  ;;  %v1787_v13 = vld [vmem:[%s2892_s27] ss:$0 sm:$0xff] }
 0x130   :  { %v86_v17 = vpop.xlane.xlu1 %85 }
 0x131   :  { %v90_v18 = vmul.f32 0.03125, %v86_v17 }
 0x133   :  { %v92_v19 = vadd.f32 1e-12, %v90_v18  ;;  %v129_v18 = vshra.s32 %v119_v9, 3 }
 0x134   :  { %v89_v20 = vpop.xlane.xlu1 %88 }
 0x135   :  { %2188 = vrsqrt.f32 %v92_v19  ;;  %v91_v21 = vmul.f32 0.03125, %v89_v20  ;;  %v2502_v19 = vadd.f32 %v1787_v13, %v144_v12  ;;  %v143_v20 = vsel %vm135_vm5, 0.0, %v2304_v11 }
 0x136   :  { %vm138_vm8 = vcmp.eq.s32.totalorder %v129_v18, %v133_v5 }
 0x137   :  { %v93_v22 = vadd.f32 1e-12, %v91_v21  ;;  %v122_v21 = vadd.s32 56, %v2490_v0 }
 0x139   :  { %2190 = vrsqrt.f32 %v93_v22 }
 0x13f   :  { %v2189_v23 = vpop.eup %2188 }
 0x140   :  { %v96_v24 = vmul.f32 %v2189_v23, %v80_v6  ;;  %v125_v6 = vshra.s32 %v2490_v0, 3  ;;  %v131_v23 = vshra.s32 %v121_v14, 3 }
 0x142   :  { %v104_v28 = vmul.f32 %v1785_v25, %v96_v24  ;;  %vm134_vm4 = vcmp.eq.s32.totalorder %v125_v6, %v133_v5  ;;  %v130_v24 = vshra.s32 %v120_v16, 3  ;;  %vm140_vm9 = vcmp.eq.s32.totalorder %v131_v23, %v133_v5 }
 0x143   :  { %v2191_v26 = vpop.eup %2190  ;;  %v142_v17 = vsel %vm134_vm4, 0.0, %v2304_v11 }
 0x144   :  { %v97_v27 = vmul.f32 %v2191_v26, %v81_v10  ;;  %v2442_v31 = vadd.f32 %v1786_v29, %v104_v28  ;;  %v128_v10 = vshra.s32 %v118_v7, 3  ;;  %v2505_v22 = vadd.f32 %v1787_v13, %v142_v17 }
 0x145   :  { %vm139_vm10 = vcmp.eq.s32.totalorder %v130_v24, %v133_v5 }
 0x146   :  { %v105_v30 = vmul.f32 %v1785_v25, %v97_v27  ;;  %vm137_vm6 = vcmp.eq.s32.totalorder %v128_v10, %v133_v5  ;;  %v2507_v27 = vadd.f32 %v1787_v13, %v143_v20 }
 0x147   :  { %v145_v26 = vsel %vm137_vm6, 0.0, %v2304_v11 }
 0x148   :  { %v2444_v32 = vadd.f32 %v1786_v29, %v105_v30  ;;  %v132_v30 = vshra.s32 %v122_v21, 3 }
 0x14a   :  { %v165_v33 = vpack.c.bf16 %v2444_v32, %v2442_v31  ;;  %vm141_vm11 = vcmp.eq.s32.totalorder %v132_v30, %v133_v5 }
 0x14c   :  { %1945 = vmatmul.mubr.msk.bf16.vlgmr.msra.gmra.mrb[0].mxu0 %vm70_vm0, %v165_v33 }
 0x21f   :  { %v226_v35 = vpop.f32.mrb[0].mxu0 }
 0x220   :  { %v1946_v36 = vpop.f32.mrb[1].mxu0  ;;  %v227_v38 = vadd.f32 %v1788_v34, %v226_v35  ;;  %v2511_v35 = vadd.f32 %v1787_v13, %v145_v26 }
 0x221   :  { %v229_v37 = vpop.f32.mrb[2].mxu0 }
 0x222   :  { %v230_v39 = vadd.f32 %v1788_v34, %v229_v37  ;;  %v1947_v40 = vpop.f32.mrb[3].mxu0 }
 0x224   :  { %v2112_v41 = vpack.i.bf16 %v230_v39, %v227_v38  ;;  %v2452_v42 = vpack.c.bf16 %v230_v39, %v227_v38  ;;  %v146_v38 = vsel %vm138_vm8, 0.0, %v2304_v11 }
 0x226   :  { %2113 = vrot.lane.b32.xlu1 %v2112_v41, %s2300_s23  ;;  %2108 = vrot.lane.b32.xlu0 %v2112_v41, %s2301_s24 }
 0x227   :  { %1956 = vmatprep.mubr.msk.bf16.mxu1 %vm269_vm2, %v2452_v42 }
 0x22a   :  { %2118 = vrot.lane.b32.xlu1 %v2112_v41, %s2302_s2  ;;  %v148_v41 = vsel %vm140_vm9, 0.0, %v2304_v11 }
 0x22e   :  { %261 = vrot.lane.b32.xlu1 %v2452_v42, %s2303_s25 }
 0x298   :  { %v2114_v43 = vpop.permute.xlu1 %2113  ;;  %v2109_v44 = vpop.permute.xlu0 %2108 }
 0x299   :  { %v2116_v45 = vunpack.i.h.bf16 %v2114_v43  ;;  %v2115_v46 = vunpack.i.l.bf16 %v2114_v43  ;;  %v2111_v47 = vunpack.i.h.bf16 %v2109_v44  ;;  %v2110_v48 = vunpack.i.l.bf16 %v2109_v44 }
 0x29a   :  { %v147_v43 = vsel %vm139_vm10, 0.0, %v2304_v11 }
 0x29b   :  { %v2461_v49 = vpack.c.bf16 %v2116_v45, %v2115_v46  ;;  %v2463_v50 = vpack.c.bf16 %v2111_v47, %v2110_v48  ;;  %v2517_v45 = vadd.f32 %v1787_v13, %v146_v38  ;;  %v2520_v47 = vadd.f32 %v1787_v13, %v148_v41 }
 0x29c   :  { %v2119_v51 = vpop.permute.xlu1 %2118 }
 0x29d   :  { %v2121_v52 = vunpack.i.h.bf16 %v2119_v51  ;;  %v2120_v53 = vunpack.i.l.bf16 %v2119_v51  ;;  %263 = vrot.lane.b32.xlu0 %v2463_v50, %s2303_s25  ;;  %265 = vrot.lane.b32.xlu1 %v2461_v49, %s2303_s25  ;;  %v149_v51 = vsel %vm141_vm11, 0.0, %v2304_v11 }
 0x29f   :  { %v2469_v54 = vpack.c.bf16 %v2121_v52, %v2120_v53  ;;  %v2522_v52 = vadd.f32 %v1787_v13, %v147_v43 }
 0x2a0   :  { %v262_v55 = vpop.permute.xlu1 %261 }
 0x2a1   :  { %267 = vrot.lane.b32.xlu0 %v2469_v54, %s2303_s25  ;;  %2082 = vmatprep.subr.msk.bf16.mxu1 %vm269_vm2, %v262_v55  ;;  %v283_v56 = vsel %vm269_vm2, %v262_v55, 0 }
 0x2a2   :  { %1949 = vmatpush3.bf16.xpose.msra.mxu1 %v283_v56 }
 0x30f   :  { %v264_v57 = vpop.permute.xlu0 %263  ;;  %v266_v59 = vpop.permute.xlu1 %265 }
 0x310   :  { %2083 = vmatprep.subr.msk.bf16.mxu1 %vm269_vm2, %v264_v57  ;;  %v286_v58 = vsel %vm269_vm2, %v264_v57, 0  ;;  %v289_v60 = vsel %vm269_vm2, %v266_v59, 0  ;;  %v2525_v57 = vadd.f32 %v1787_v13, %v149_v51 }
 0x311   :  { %1951 = vmatpush3.bf16.xpose.msra.mxu1 %v286_v58 }
 0x312   :  { %2084 = vmatprep.subr.msk.bf16.mxu1 %vm269_vm2, %v266_v59 }
 0x313   :  { %v268_v61 = vpop.permute.xlu0 %267 }
 0x314   :  { %v292_v62 = vsel %vm269_vm2, %v268_v61, 0 }
 0x319   :  { %1953 = vmatpush3.bf16.xpose.msra.mxu1 %v289_v60 }
 0x31a   :  { %2085 = vmatprep.subr.msk.bf16.mxu1 %vm269_vm2, %v268_v61 }
 0x321   :  { %1955 = vmatpush3.bf16.xpose.msra.mxu1 %v292_v62 }
 0x322   :  { %1996 = vmatprep.subr.bf16.mxu1 %v2298_v15 }
 0x328   :  { %1957 = vmatmul.mubr.msk.bf16.vlgmr.msra.gmra.mrb[0].mxu1 %vm269_vm2, %v2463_v50 }
 0x329   :  { %1960 = vmatprep.mubr.msk.bf16.mxu1 %vm269_vm2, %v2461_v49 }
 0x330   :  { %1961 = vmatmul.mubr.msk.bf16.gmra.mrb[4].mxu1 %vm269_vm2, %v2469_v54 }
 0x331   :  { %2004 = vmatprep.mubr.msk.bf16.mxu1 %vm2299_vm1, %v2298_v15 }
 0x3fb   :  { %v1958_v25 = vpop.f32.mrb[0].mxu1 }
 0x3fc   :  { %v337_v28 = vadd.f32 %v1958_v25, %v2502_v19  ;;  %v328_v29 = vpop.f32.mrb[1].mxu1 }
 0x3fd   :  { %v329_v33 = vadd.f32 %v328_v29, %v2505_v22  ;;  %v1959_v34 = vpop.f32.mrb[2].mxu1 }
 0x3fe   :  { %v331_v36 = vpop.f32.mrb[3].mxu1  ;;  %v366_v37 = vsel %vm359_vm7, %v337_v28, -inf  ;;  %v340_v46 = vadd.f32 %v1959_v34, %v2511_v35 }
 0x3ff   :  { %v332_v39 = vadd.f32 %v331_v36, %v2507_v27  ;;  %367 = vmax.xlane.f32.xlu0 %v366_v37  ;;  %v360_v40 = vsel %vm359_vm7, %v329_v33, -inf }
 0x400   :  { %361 = vmax.xlane.f32.xlu1 %v360_v40  ;;  %v369_v59 = vsel %vm359_vm7, %v340_v46, -inf }
 0x401   :  { %v363_v44 = vsel %vm359_vm7, %v332_v39, -inf }
 0x403   :  { %v1962_v48 = vpop.f32.mrb[4].mxu1  ;;  %364 = vmax.xlane.f32.xlu0 %v363_v44 }
 0x404   :  { %v344_v53 = vpop.f32.mrb[5].mxu1  ;;  %v353_v60 = vadd.f32 %v1962_v48, %v2520_v47 }
 0x405   :  { %v345_v55 = vadd.f32 %v344_v53, %v2517_v45  ;;  %v1963_v56 = vpop.f32.mrb[6].mxu1 }
 0x406   :  { %v347_v58 = vpop.f32.mrb[7].mxu1  ;;  %v356_v1 = vadd.f32 %v1963_v56, %v2525_v57  ;;  %v378_v2 = vsel %vm359_vm7, %v353_v60, -inf }
 0x407   :  { %v348_v61 = vadd.f32 %v347_v58, %v2522_v52  ;;  %370 = vmax.xlane.f32.xlu0 %v369_v59  ;;  %v372_v62 = vsel %vm359_vm7, %v345_v55, -inf }
 0x408   :  { %373 = vmax.xlane.f32.xlu1 %v372_v62  ;;  %v381_v3 = vsel %vm359_vm7, %v356_v1, -inf }
 0x409   :  { %v375_v63 = vsel %vm359_vm7, %v348_v61, -inf }
 0x40b   :  { %376 = vmax.xlane.f32.xlu0 %v375_v63 }
 0x40c   :  { %379 = vmax.xlane.f32.xlu1 %v378_v2 }
 0x40f   :  { %382 = vmax.xlane.f32.xlu0 %v381_v3 }
 0x41d   :  { %452 = vrot.lane.b32.xlu1 %v2452_v42, %s2305_s28 }
 0x48c   :  { %v368_v4 = vpop.xlane.xlu0 %367 }
 0x48d   :  { %v386_v5 = vsub.f32 %v337_v28, %v368_v4  ;;  %v362_v6 = vpop.xlane.xlu1 %361 }
 0x48e   :  { %v384_v7 = vsub.f32 %v329_v33, %v362_v6 }
 0x48f   :  { %v396_v8 = vmul.f32 1.442695, %v386_v5 }
 0x490   :  { %v392_v9 = vmul.f32 1.442695, %v384_v7  ;;  %v365_v10 = vpop.xlane.xlu0 %364 }
 0x491   :  { %2192 = vpow2.f32 %v396_v8  ;;  %v385_v11 = vsub.f32 %v332_v39, %v365_v10 }
 0x492   :  { %2194 = vpow2.f32 %v392_v9 }
 0x493   :  { %v394_v16 = vmul.f32 1.442695, %v385_v11 }
 0x494   :  { %v371_v12 = vpop.xlane.xlu0 %370 }
 0x495   :  { %v387_v13 = vsub.f32 %v340_v46, %v371_v12  ;;  %v374_v14 = vpop.xlane.xlu1 %373 }
 0x496   :  { %v388_v18 = vsub.f32 %v345_v55, %v374_v14 }
 0x497   :  { %v398_v17 = vmul.f32 1.442695, %v387_v13 }
 0x498   :  { %v377_v20 = vpop.xlane.xlu0 %376  ;;  %v400_v25 = vmul.f32 1.442695, %v388_v18 }
 0x499   :  { %2196 = vpow2.f32 %v398_v17  ;;  %v380_v21 = vpop.xlane.xlu1 %379  ;;  %v389_v24 = vsub.f32 %v348_v61, %v377_v20 }
 0x49a   :  { %v390_v42 = vsub.f32 %v353_v60, %v380_v21  ;;  %2198 = vpow2.f32 %v394_v16 }
 0x49b   :  { %v2537_v23 = vpop.eup %2192  ;;  %v402_v36 = vmul.f32 1.442695, %v389_v24 }
 0x49c   :  { %v404_v26 = vmul.f32 1.442695, %v390_v42  ;;  %v383_v28 = vpop.xlane.xlu0 %382  ;;  %v414_v29 = vsel %vm359_vm7, %v2537_v23, 0.0  ;;  %v2195_v30 = vpop.eup %2194 }
 0x49d   :  { %v391_v33 = vsub.f32 %v356_v1, %v383_v28  ;;  %415 = vadd.xlane.f32.xlu1 %v414_v29  ;;  %v453_v34 = vpop.permute.xlu1 %452  ;;  %v408_v38 = vsel %vm359_vm7, %v2195_v30, 0.0  ;;  %v2171_v29 = vld [vmem:[%s2868_s7 + $0x8] sm:$0xff]  }
 0x49e   :  { %2200 = vpow2.f32 %v404_v26  ;;  %1964 = vmatprep.subr.bf16.mxu0 %v453_v34 }
 0x49f   :  { %v406_v37 = vmul.f32 1.442695, %v391_v33  ;;  %1965 = vmatpush3.bf16.msra.mxu0 %v453_v34  ;;  %2202 = vpow2.f32 %v400_v25 }
 0x4a1   :  { %2204 = vpow2.f32 %v406_v37  ;;  %409 = vadd.xlane.f32.xlu1 %v408_v38 }
 0x4a2   :  { %2206 = vpow2.f32 %v402_v36 }
 0x4a3   :  { %v2197_v39 = vpop.eup %2196 }
 0x4a4   :  { %v417_v40 = vsel %vm359_vm7, %v2197_v39, 0.0  ;;  %v2199_v41 = vpop.eup %2198 }
 0x4a5   :  { %418 = vadd.xlane.f32.xlu0 %v417_v40  ;;  %v411_v44 = vsel %vm359_vm7, %v2199_v41, 0.0 }
 0x4a8   :  { %v2543_v43 = vpop.eup %2200 }
 0x4a9   :  { %412 = vadd.xlane.f32.xlu0 %v411_v44  ;;  %v426_v46 = vsel %vm359_vm7, %v2543_v43, 0.0  ;;  %v2203_v48 = vpop.eup %2202 }
 0x4aa   :  { %427 = vadd.xlane.f32.xlu1 %v426_v46  ;;  %v420_v56 = vsel %vm359_vm7, %v2203_v48, 0.0 }
 0x4ab   :  { %v2205_v51 = vpop.eup %2204 }
 0x4ac   :  { %v429_v53 = vsel %vm359_vm7, %v2205_v51, 0.0  ;;  %v2207_v55 = vpop.eup %2206 }
 0x4ad   :  { %430 = vadd.xlane.f32.xlu0 %v429_v53  ;;  %v423_v58 = vsel %vm359_vm7, %v2207_v55, 0.0 }
 0x4ae   :  { %421 = vadd.xlane.f32.xlu1 %v420_v56 }
 0x4b1   :  { %424 = vadd.xlane.f32.xlu0 %v423_v58 }
 0x4bf   :  { %456 = vrot.lane.b32.xlu1 %v2461_v49, %s2305_s28 }
 0x4c3   :  { %458 = vrot.lane.b32.xlu1 %v2469_v54, %s2305_s28 }
 0x4c7   :  { %454 = vrot.lane.b32.xlu0 %v2463_v50, %s2305_s28 }
 0x52a   :  { %v416_v59 = vpop.xlane.xlu1 %415 }
 0x52e   :  { %v410_v60 = vpop.xlane.xlu1 %409 }
 0x52f   :  { %2208 = vrcp.f32 %v410_v60 }
 0x532   :  { %v419_v61 = vpop.xlane.xlu0 %418 }
 0x536   :  { %v413_v62 = vpop.xlane.xlu0 %412 }
 0x537   :  { %2210 = vrcp.f32 %v413_v62  ;;  %v428_v63 = vpop.xlane.xlu1 %427 }
 0x538   :  { %2212 = vrcp.f32 %v419_v61 }
 0x539   :  { %2214 = vrcp.f32 %v416_v59  ;;  %v2209_v49 = vpop.eup %2208 }
 0x53a   :  { %v431_v1 = vpop.xlane.xlu0 %430  ;;  %v433_v6 = vmul.f32 %v2209_v49, %v2195_v30  ;;  %v1800_v49 = vld [vmem:[%s2869_s8] ss:$0 sm:$0xff] }
 0x53b   :  { %v422_v2 = vpop.xlane.xlu1 %421 }
 0x53c   :  { %2216 = vrcp.f32 %v422_v2 }
 0x53e   :  { %v425_v3 = vpop.xlane.xlu0 %424 }
 0x53f   :  { %2218 = vrcp.f32 %v425_v3  ;;  %v457_v54 = vpop.permute.xlu1 %456 }
 0x540   :  { %2220 = vrcp.f32 %v431_v1 }
 0x541   :  { %v2211_v4 = vpop.eup %2210  ;;  %2222 = vrcp.f32 %v428_v63 }
 0x542   :  { %v455_v5 = vpop.permute.xlu0 %454  ;;  %v435_v50 = vmul.f32 %v2211_v4, %v2199_v41  ;;  %v2213_v8 = vpop.eup %2212 }
 0x543   :  { %1966 = vmatprep.subr.bf16.mxu0 %v455_v5  ;;  %v2215_v9 = vpop.eup %2214  ;;  %v459_v11 = vpop.permute.xlu1 %458  ;;  %v439_v13 = vmul.f32 %v2213_v8, %v2197_v39 }
 0x544   :  { %1967 = vmatpush3.bf16.msra.mxu0 %v455_v5  ;;  %v448_v7 = vpack.c.bf16 %v435_v50, %v433_v6  ;;  %v437_v16 = vmul.f32 %v2215_v9, %v2537_v23  ;;  %v2170_v23 = vld [vmem:[%s2868_s7] sm:$0xff]  }
 0x545   :  { %1968 = vmatprep.subr.bf16.mxu0 %v457_v54 }
 0x546   :  { %1972 = vmatprep.mubr.msk.bf16.mxu0 %vm359_vm7, %v448_v7  ;;  %v2217_v10 = vpop.eup %2216  ;;  %v449_v18 = vpack.c.bf16 %v439_v13, %v437_v16 }
 0x547   :  { %v441_v17 = vmul.f32 %v2217_v10, %v2203_v48 }
 0x548   :  { %1969 = vmatpush3.bf16.msra.mxu0 %v457_v54 }
 0x549   :  { %v2219_v12 = vpop.eup %2218  ;;  %1970 = vmatprep.subr.bf16.mxu0 %v459_v11 }
 0x54a   :  { %v443_v14 = vmul.f32 %v2219_v12, %v2207_v55  ;;  %v2221_v20 = vpop.eup %2220 }
 0x54b   :  { %v2223_v42 = vpop.eup %2222  ;;  %v447_v24 = vmul.f32 %v2221_v20, %v2205_v51 }
 0x54c   :  { %1971 = vmatpush3.bf16.msra.mxu0 %v459_v11  ;;  %v450_v21 = vpack.c.bf16 %v443_v14, %v441_v17  ;;  %v445_v25 = vmul.f32 %v2223_v42, %v2543_v43 }
 0x54d   :  { %1980 = vmatprep.subr.bf16.mxu0 %v2298_v15 }
 0x54e   :  { %v451_v26 = vpack.c.bf16 %v447_v24, %v445_v25  ;;  %v2173_v24 = vld [vmem:[%s2872_s11 + $0x8] sm:$0xff]  }
 0x54f   :  { %1973 = vmatmul.mubr.msk.bf16.vlgmr.msra.gmra.mrb[4].mxu0 %vm359_vm7, %v449_v18 }
 0x550   :  { %1976 = vmatprep.mubr.msk.bf16.mxu0 %vm359_vm7, %v450_v21  ;;  %1981 = vmatpush3.bf16.msra.mxu0 %v2170_v23 }
 0x551   :  { %1982 = vmatprep.subr.bf16.mxu0 %v2298_v15 }
 0x554   :  { %1983 = vmatpush3.bf16.msra.mxu0 %v2171_v29 }
 0x555   :  { %1988 = vmatprep.subr.bf16.mxu0 %v2298_v15 }
 0x557   :  { %1977 = vmatmul.mubr.msk.bf16.gmra.mrb[8].mxu0 %vm359_vm7, %v451_v26 }
 0x558   :  { %1984 = vmatprep.mubr.msk.bf16.mxu0 %vm2299_vm1, %v2298_v15 }
 0x622   :  { %v1974_v28 = vpop.f32.mrb[4].mxu0 }
 0x623   :  { %v510_v30 = vpop.f32.mrb[5].mxu0 }
 0x624   :  { %v1975_v33 = vpop.f32.mrb[6].mxu0 }
 0x625   :  { %v2122_v34 = vpack.i.bf16 %v1975_v33, %v1974_v28  ;;  %v513_v36 = vpop.f32.mrb[7].mxu0 }
 0x627   :  { %2123 = vrot.lane.b32.xlu1 %v2122_v34, %s2306_s21 }
 0x62a   :  { %v1978_v37 = vpop.f32.mrb[8].mxu0 }
 0x62b   :  { %v526_v38 = vpop.f32.mrb[9].mxu0 }
 0x62c   :  { %v1979_v39 = vpop.f32.mrb[10].mxu0 }
 0x62d   :  { %v2132_v40 = vpack.i.bf16 %v1979_v39, %v1978_v37  ;;  %v529_v41 = vpop.f32.mrb[11].mxu0 }
 0x62e   :  { %v2127_v43 = vpack.i.bf16 %v529_v41, %v526_v38 }
 0x62f   :  { %2133 = vrot.lane.b32.xlu1 %v2132_v40, %s2307_s1  ;;  %v1805_v40 = vld [vmem:[%s2871_s10] ss:$0 sm:$0xff] }
 0x630   :  { %2128 = vrot.lane.b32.xlu0 %v2127_v43, %s2883_s22 }
 0x699   :  { %v2124_v44 = vpop.permute.xlu1 %2123 }
 0x69a   :  { %v2126_v46 = vunpack.i.h.bf16 %v2124_v44  ;;  %v2125_v48 = vunpack.i.l.bf16 %v2124_v44 }
 0x69c   :  { %v565_v58 = vsel %vm269_vm2, %v510_v30, %v2125_v48  ;;  %v566_v59 = vsel %vm269_vm2, %v513_v36, %v2126_v46  ;;  %v1804_v36 = vld [vmem:[%s2870_s9] ss:$0 sm:$0xff] }
 0x69d   :  { %v2174_v48 = vld [vmem:[%s2874_s13] sm:$0xff]  }
 0x69e   :  { %1997 = vmatpush3.bf16.msra.mxu1 %v2174_v48 }
 0x69f   :  { %1998 = vmatprep.subr.bf16.mxu1 %v2298_v15 }
 0x6a1   :  { %v2134_v51 = vpop.permute.xlu1 %2133 }
 0x6a2   :  { %v2129_v53 = vpop.permute.xlu0 %2128  ;;  %v2136_v60 = vunpack.i.h.bf16 %v2134_v51  ;;  %v2135_v61 = vunpack.i.l.bf16 %v2134_v51  ;;  %v2175_v51 = vld [vmem:[%s2874_s13 + $0x8] sm:$0xff]  }
 0x6a3   :  { %v2131_v55 = vunpack.i.h.bf16 %v2129_v53  ;;  %v2130_v56 = vunpack.i.l.bf16 %v2129_v53  ;;  %1999 = vmatpush3.bf16.msra.mxu1 %v2175_v51  ;;  %v2176_v53 = vld [vmem:[%s2874_s13 + $0x10] sm:$0xff]  }
 0x6a4   :  { %2000 = vmatprep.subr.bf16.mxu1 %v2298_v15 }
 0x6a5   :  { %v569_v62 = vsel %vm567_vm12, %v566_v59, %v2131_v55  ;;  %v568_v63 = vsel %vm567_vm12, %v565_v58, %v2130_v56  ;;  %v2177_v55 = vld [vmem:[%s2874_s13 + $0x18] sm:$0xff]   ;;  %v1806_v56 = vld [vmem:[%s2873_s12] ss:$0 sm:$0xff] }
 0x6a6   :  { %v572_v1 = vsel %vm570_vm13, %v569_v62, %v2136_v60  ;;  %v571_v2 = vsel %vm570_vm13, %v568_v63, %v2135_v61 }
 0x6a7   :  { %v573_v3 = vpack.c.bf16 %v572_v1, %v571_v2  ;;  %2001 = vmatpush3.bf16.msra.mxu1 %v2176_v53 }
 0x6a8   :  { %2002 = vmatprep.subr.bf16.mxu1 %v2298_v15 }
 0x6a9   :  { %1985 = vmatmul.mubr.msk.bf16.vlgmr.msra.gmra.mrb[12].mxu0 %vm70_vm0, %v573_v3 }
 0x6aa   :  { %1992 = vmatprep.mubr.msk.bf16.mxu0 %vm2299_vm1, %v2298_v15 }
 0x6ab   :  { %2003 = vmatpush3.bf16.msra.mxu1 %v2177_v55 }
 0x77c   :  { %v634_v4 = vpop.f32.mrb[12].mxu0 }
 0x77d   :  { %v635_v54 = vadd.f32 %v1800_v49, %v634_v4  ;;  %v1986_v5 = vpop.f32.mrb[13].mxu0 }
 0x77e   :  { %v637_v6 = vpop.f32.mrb[14].mxu0 }
 0x77f   :  { %v638_v50 = vadd.f32 %v1800_v49, %v637_v6  ;;  %v1987_v7 = vpop.f32.mrb[15].mxu0  ;;  %v641_v8 = vadd.f32 %v635_v54, %v2442_v31 }
 0x781   :  { %v645_v9 = vsel %vm70_vm0, %v641_v8, 0.0  ;;  %v642_v10 = vadd.f32 %v638_v50, %v2444_v32  ;;  %v2172_v32 = vld [vmem:[%s2872_s11] sm:$0xff]  }
 0x782   :  { %646 = vadd.xlane.f32.xlu0 %v645_v9  ;;  %1989 = vmatpush3.bf16.msra.mxu0 %v2172_v32 }
 0x783   :  { %v648_v11 = vsel %vm70_vm0, %v642_v10, 0.0  ;;  %1990 = vmatprep.subr.bf16.mxu0 %v2298_v15 }
 0x784   :  { %649 = vadd.xlane.f32.xlu1 %v648_v11 }
 0x786   :  { %1991 = vmatpush3.bf16.msra.mxu0 %v2173_v24 }
 0x787   :  { %2008 = vmatprep.subr.bf16.mxu0 %v2298_v15 }
 0x80f   :  { %v647_v12 = vpop.xlane.xlu0 %646 }
 0x810   :  { %v651_v13 = vmul.f32 0.03125, %v647_v12 }
 0x811   :  { %v650_v14 = vpop.xlane.xlu1 %649 }
 0x812   :  { %v653_v16 = vsub.f32 %v641_v8, %v651_v13  ;;  %v652_v17 = vmul.f32 0.03125, %v650_v14 }
 0x814   :  { %v654_v18 = vsub.f32 %v642_v10, %v652_v17  ;;  %v655_v20 = vmul.f32 %v653_v16, %v653_v16 }
 0x816   :  { %v657_v21 = vsel %vm70_vm0, %v655_v20, 0.0  ;;  %v656_v42 = vmul.f32 %v654_v18, %v654_v18 }
 0x817   :  { %658 = vadd.xlane.f32.xlu0 %v657_v21 }
 0x818   :  { %v660_v31 = vsel %vm70_vm0, %v656_v42, 0.0 }
 0x81b   :  { %661 = vadd.xlane.f32.xlu0 %v660_v31 }
 0x8a4   :  { %v659_v25 = vpop.xlane.xlu0 %658 }
 0x8a5   :  { %v663_v26 = vmul.f32 0.03125, %v659_v25 }
 0x8a7   :  { %v665_v23 = vadd.f32 1e-12, %v663_v26 }
 0x8a8   :  { %v662_v28 = vpop.xlane.xlu0 %661 }
 0x8a9   :  { %2224 = vrsqrt.f32 %v665_v23  ;;  %v664_v29 = vmul.f32 0.03125, %v662_v28 }
 0x8ab   :  { %v666_v30 = vadd.f32 1e-12, %v664_v29 }
 0x8ad   :  { %2226 = vrsqrt.f32 %v666_v30 }
 0x8b3   :  { %v2225_v33 = vpop.eup %2224 }
 0x8b4   :  { %v669_v34 = vmul.f32 %v2225_v33, %v653_v16 }
 0x8b6   :  { %v677_v38 = vmul.f32 %v1804_v36, %v669_v34 }
 0x8b7   :  { %v2227_v37 = vpop.eup %2226 }
 0x8b8   :  { %v670_v39 = vmul.f32 %v2227_v37, %v654_v18  ;;  %v685_v43 = vadd.f32 %v1805_v40, %v677_v38  ;;  %v1810_v18 = vld [vmem:[%s2875_s14] ss:$0 sm:$0xff] }
 0x8ba   :  { %v678_v41 = vmul.f32 %v1804_v36, %v670_v39 }
 0x8bc   :  { %v686_v44 = vadd.f32 %v1805_v40, %v678_v41 }
 0x8be   :  { %v687_v46 = vpack.c.bf16 %v686_v44, %v685_v43 }
 0x8c0   :  { %1993 = vmatmul.mubr.msk.bf16.vlgmr.msra.gmra.mrb[16].mxu0 %vm70_vm0, %v687_v46 }
 0x8c1   :  { %2012 = vmatprep.mubr.msk.bf16.mxu0 %vm2299_vm1, %v2298_v15 }
 0x993   :  { %v748_v58 = vpop.f32.mrb[16].mxu0 }
 0x994   :  { %v749_v59 = vadd.f32 %v1806_v56, %v748_v58  ;;  %v1994_v60 = vpop.f32.mrb[17].mxu0 }
 0x995   :  { %v751_v61 = vpop.f32.mrb[18].mxu0 }
 0x996   :  { %v757_v62 = vmul.f32 0.044715, %v749_v59  ;;  %v752_v63 = vadd.f32 %v1806_v56, %v751_v61  ;;  %v1995_v1 = vpop.f32.mrb[19].mxu0  ;;  %v755_v11 = vmul.f32 0.5, %v749_v59 }
 0x997   :  { %v1817_v1 = vld [vmem:[%s2877_s16] ss:$0 sm:$0xff] }
 0x998   :  { %v759_v2 = vmul.f32 %v757_v62, %v749_v59  ;;  %v758_v3 = vmul.f32 0.044715, %v752_v63  ;;  %v756_v12 = vmul.f32 0.5, %v752_v63 }
 0x99a   :  { %v761_v49 = vmul.f32 %v759_v2, %v749_v59  ;;  %v760_v4 = vmul.f32 %v758_v3, %v752_v63 }
 0x99c   :  { %v763_v54 = vadd.f32 %v761_v49, %v749_v59  ;;  %v762_v5 = vmul.f32 %v760_v4, %v752_v63  ;;  %v1816_v59 = vld [vmem:[%s2876_s15] ss:$0 sm:$0xff] }
 0x99e   :  { %v765_v6 = vmul.f32 0.7978846, %v763_v54  ;;  %v764_v50 = vadd.f32 %v762_v5, %v752_v63  ;;  %v1823_v54 = vld [vmem:[%s2867_s6 + $0x1] ss:$0 sm:$0xff] }
 0x9a0   :  { %2228 = vtanh.f32 %v765_v6  ;;  %v766_v7 = vmul.f32 0.7978846, %v764_v50 }
 0x9a2   :  { %2230 = vtanh.f32 %v766_v7 }
 0x9aa   :  { %v2229_v8 = vpop.eup %2228 }
 0x9ab   :  { %v769_v9 = vadd.f32 1.0, %v2229_v8 }
 0x9ac   :  { %v2231_v10 = vpop.eup %2230 }
 0x9ad   :  { %v770_v13 = vadd.f32 1.0, %v2231_v10  ;;  %v771_v14 = vmul.f32 %v769_v9, %v755_v11 }
 0x9af   :  { %v772_v16 = vmul.f32 %v770_v13, %v756_v12 }
 0x9b1   :  { %v773_v17 = vpack.c.bf16 %v772_v16, %v771_v14 }
 0x9b3   :  { %2005 = vmatmul.mubr.msk.bf16.vlgmr.msra.gmra.mrb[8].mxu1 %vm359_vm7, %v773_v17 }
 0xa86   :  { %v850_v20 = vpop.f32.mrb[8].mxu1 }
 0xa87   :  { %v851_v21 = vadd.f32 %v1810_v18, %v850_v20  ;;  %v2006_v42 = vpop.f32.mrb[9].mxu1 }
 0xa88   :  { %v853_v31 = vpop.f32.mrb[10].mxu1 }
 0xa89   :  { %v854_v32 = vadd.f32 %v1810_v18, %v853_v31  ;;  %v2007_v24 = vpop.f32.mrb[11].mxu1  ;;  %v857_v25 = vadd.f32 %v851_v21, %v685_v43  ;;  %v2178_v43 = vld [vmem:[%s2866_s5 + $0x10] sm:$0xff]  }
 0xa8a   :  { %2009 = vmatpush3.bf16.msra.mxu0 %v2178_v43 }
 0xa8b   :  { %v861_v26 = vsel %vm70_vm0, %v857_v25, 0.0  ;;  %v858_v23 = vadd.f32 %v854_v32, %v686_v44  ;;  %v2179_v44 = vld [vmem:[%s2866_s5 + $0x18] sm:$0xff]   ;;  %2010 = vmatprep.subr.bf16.mxu0 %v2298_v15 }
 0xa8c   :  { %862 = vadd.xlane.f32.xlu0 %v861_v26 }
 0xa8d   :  { %v864_v28 = vsel %vm70_vm0, %v858_v23, 0.0 }
 0xa8e   :  { %865 = vadd.xlane.f32.xlu1 %v864_v28  ;;  %2011 = vmatpush3.bf16.msra.mxu0 %v2179_v44 }
 0xb19   :  { %v863_v29 = vpop.xlane.xlu0 %862 }
 0xb1a   :  { %v867_v30 = vmul.f32 0.03125, %v863_v29 }
 0xb1b   :  { %v866_v33 = vpop.xlane.xlu1 %865 }
 0xb1c   :  { %v869_v34 = vsub.f32 %v857_v25, %v867_v30  ;;  %v868_v36 = vmul.f32 0.03125, %v866_v33 }
 0xb1e   :  { %v870_v37 = vsub.f32 %v858_v23, %v868_v36  ;;  %v871_v38 = vmul.f32 %v869_v34, %v869_v34 }
 0xb20   :  { %v873_v39 = vsel %vm70_vm0, %v871_v38, 0.0  ;;  %v872_v40 = vmul.f32 %v870_v37, %v870_v37 }
 0xb21   :  { %874 = vadd.xlane.f32.xlu0 %v873_v39 }
 0xb22   :  { %v876_v41 = vsel %vm70_vm0, %v872_v40, 0.0 }
 0xb23   :  { %877 = vadd.xlane.f32.xlu1 %v876_v41 }
 0xbae   :  { %v875_v46 = vpop.xlane.xlu0 %874 }
 0xbaf   :  { %v879_v48 = vmul.f32 0.03125, %v875_v46 }
 0xbb0   :  { %v878_v51 = vpop.xlane.xlu1 %877 }
 0xbb1   :  { %v881_v53 = vadd.f32 1e-12, %v879_v48  ;;  %v880_v55 = vmul.f32 0.03125, %v878_v51 }
 0xbb3   :  { %2232 = vrsqrt.f32 %v881_v53  ;;  %v882_v56 = vadd.f32 1e-12, %v880_v55 }
 0xbb5   :  { %2234 = vrsqrt.f32 %v882_v56 }
 0xbbd   :  { %v2233_v58 = vpop.eup %2232 }
 0xbbe   :  { %v885_v60 = vmul.f32 %v2233_v58, %v869_v34 }
 0xbbf   :  { %v2235_v61 = vpop.eup %2234 }
 0xbc0   :  { %v893_v62 = vmul.f32 %v1816_v59, %v885_v60  ;;  %v886_v63 = vmul.f32 %v2235_v61, %v870_v37 }
 0xbc2   :  { %v894_v2 = vmul.f32 %v1816_v59, %v886_v63  ;;  %v2651_v3 = vadd.f32 %v1817_v1, %v893_v62 }
 0xbc4   :  { %v2653_v49 = vadd.f32 %v1817_v1, %v894_v2 }
 0xbc6   :  { %v903_v4 = vpack.c.bf16 %v2653_v49, %v2651_v3 }
 0xbc8   :  { %2013 = vmatmul.mubr.msk.bf16.vlgmr.msra.gmra.mrb[20].mxu0 %vm70_vm0, %v903_v4 }
 0xc9b   :  { %v966_v5 = vpop.f32.mrb[20].mxu0 }
 0xc9c   :  { %v2014_v6 = vpop.f32.mrb[21].mxu0  ;;  %v967_v7 = vadd.f32 %v1823_v54, %v966_v5 }
 0xc9d   :  { %v969_v50 = vpop.f32.mrb[22].mxu0 }
 0xc9e   :  { %v970_v8 = vadd.f32 %v1823_v54, %v969_v50  ;;  %v2015_v9 = vpop.f32.mrb[23].mxu0 }
 0xca0   :  { %v2142_v10 = vpack.i.bf16 %v970_v8, %v967_v7  ;;  %v2661_v11 = vpack.c.bf16 %v970_v8, %v967_v7 }
 0xca2   :  { %2143 = vrot.lane.b32.xlu1 %v2142_v10, %s2300_s23  ;;  %2138 = vrot.lane.b32.xlu0 %v2142_v10, %s2301_s24 }
 0xca3   :  { %2024 = vmatprep.mubr.msk.bf16.mxu1 %vm269_vm2, %v2661_v11 }
 0xca6   :  { %2148 = vrot.lane.b32.xlu1 %v2142_v10, %s2302_s2 }
 0xcaa   :  { %1001 = vrot.lane.b32.xlu1 %v2661_v11, %s2303_s25 }
 0xd14   :  { %v2144_v12 = vpop.permute.xlu1 %2143  ;;  %v2139_v13 = vpop.permute.xlu0 %2138 }
 0xd15   :  { %v2146_v14 = vunpack.i.h.bf16 %v2144_v12  ;;  %v2145_v16 = vunpack.i.l.bf16 %v2144_v12  ;;  %v2141_v17 = vunpack.i.h.bf16 %v2139_v13  ;;  %v2140_v18 = vunpack.i.l.bf16 %v2139_v13 }
 0xd17   :  { %v2670_v20 = vpack.c.bf16 %v2146_v14, %v2145_v16  ;;  %v2672_v21 = vpack.c.bf16 %v2141_v17, %v2140_v18 }
 0xd18   :  { %v2149_v42 = vpop.permute.xlu1 %2148 }
 0xd19   :  { %v2151_v31 = vunpack.i.h.bf16 %v2149_v42  ;;  %v2150_v32 = vunpack.i.l.bf16 %v2149_v42  ;;  %1003 = vrot.lane.b32.xlu0 %v2672_v21, %s2303_s25  ;;  %1005 = vrot.lane.b32.xlu1 %v2670_v20, %s2303_s25 }
 0xd1b   :  { %v2678_v24 = vpack.c.bf16 %v2151_v31, %v2150_v32 }
 0xd1c   :  { %v1002_v25 = vpop.permute.xlu1 %1001 }
 0xd1d   :  { %v1022_v26 = vsel %vm269_vm2, %v1002_v25, 0  ;;  %1007 = vrot.lane.b32.xlu0 %v2678_v24, %s2303_s25  ;;  %2086 = vmatprep.subr.msk.bf16.mxu1 %vm269_vm2, %v1002_v25  ;;  %s2893_s25 = smov 16  }
 0xd1e   :  { %2017 = vmatpush3.bf16.xpose.msra.mxu1 %v1022_v26 }
 0xd8b   :  { %v1004_v23 = vpop.permute.xlu0 %1003  ;;  %v1006_v29 = vpop.permute.xlu1 %1005 }
 0xd8c   :  { %v1025_v28 = vsel %vm269_vm2, %v1004_v23, 0  ;;  %2087 = vmatprep.subr.msk.bf16.mxu1 %vm269_vm2, %v1004_v23  ;;  %v1028_v30 = vsel %vm269_vm2, %v1006_v29, 0 }
 0xd8d   :  { %2019 = vmatpush3.bf16.xpose.msra.mxu1 %v1025_v28 }
 0xd8e   :  { %2088 = vmatprep.subr.msk.bf16.mxu1 %vm269_vm2, %v1006_v29 }
 0xd8f   :  { %v1008_v33 = vpop.permute.xlu0 %1007 }
 0xd90   :  { %v1031_v34 = vsel %vm269_vm2, %v1008_v33, 0 }
 0xd95   :  { %2021 = vmatpush3.bf16.xpose.msra.mxu1 %v1028_v30 }
 0xd96   :  { %2089 = vmatprep.subr.msk.bf16.mxu1 %vm269_vm2, %v1008_v33 }
 0xd9d   :  { %2023 = vmatpush3.bf16.xpose.msra.mxu1 %v1031_v34 }
 0xd9e   :  { %2064 = vmatprep.subr.bf16.mxu1 %v2298_v15 }
 0xda4   :  { %2025 = vmatmul.mubr.msk.bf16.vlgmr.msra.gmra.mrb[12].mxu1 %vm269_vm2, %v2672_v21 }
 0xda5   :  { %2028 = vmatprep.mubr.msk.bf16.mxu1 %vm269_vm2, %v2670_v20 }
 0xdac   :  { %2029 = vmatmul.mubr.msk.bf16.gmra.mrb[16].mxu1 %vm269_vm2, %v2678_v24 }
 0xdad   :  { %2072 = vmatprep.mubr.msk.bf16.mxu1 %vm2299_vm1, %v2298_v15 }
 0xe77   :  { %v2026_v36 = vpop.f32.mrb[12].mxu1 }
 0xe78   :  { %v1076_v37 = vadd.f32 %v2026_v36, %v2502_v19  ;;  %v1067_v38 = vpop.f32.mrb[13].mxu1 }
 0xe79   :  { %v1068_v39 = vadd.f32 %v1067_v38, %v2505_v22  ;;  %v2027_v40 = vpop.f32.mrb[14].mxu1 }
 0xe7a   :  { %v1070_v41 = vpop.f32.mrb[15].mxu1  ;;  %v1104_v43 = vsel %vm359_vm7, %v1076_v37, -inf  ;;  %v1079_v51 = vadd.f32 %v2027_v40, %v2511_v35 }
 0xe7b   :  { %v1071_v44 = vadd.f32 %v1070_v41, %v2507_v27  ;;  %1105 = vmax.xlane.f32.xlu0 %v1104_v43  ;;  %v1098_v46 = vsel %vm359_vm7, %v1068_v39, -inf }
 0xe7c   :  { %1099 = vmax.xlane.f32.xlu1 %v1098_v46  ;;  %v1107_v58 = vsel %vm359_vm7, %v1079_v51, -inf }
 0xe7d   :  { %v1101_v48 = vsel %vm359_vm7, %v1071_v44, -inf }
 0xe7f   :  { %v2030_v53 = vpop.f32.mrb[16].mxu1  ;;  %1102 = vmax.xlane.f32.xlu0 %v1101_v48 }
 0xe80   :  { %v1083_v19 = vpop.f32.mrb[17].mxu1  ;;  %v1092_v59 = vadd.f32 %v2030_v53, %v2520_v47 }
 0xe81   :  { %v1084_v55 = vadd.f32 %v1083_v19, %v2517_v45  ;;  %v2031_v22 = vpop.f32.mrb[18].mxu1 }
 0xe82   :  { %v1086_v56 = vpop.f32.mrb[19].mxu1  ;;  %v1095_v35 = vadd.f32 %v2031_v22, %v2525_v57  ;;  %v1116_v62 = vsel %vm359_vm7, %v1092_v59, -inf }
 0xe83   :  { %v1087_v27 = vadd.f32 %v1086_v56, %v2522_v52  ;;  %1108 = vmax.xlane.f32.xlu0 %v1107_v58  ;;  %v1110_v60 = vsel %vm359_vm7, %v1084_v55, -inf }
 0xe84   :  { %1111 = vmax.xlane.f32.xlu1 %v1110_v60  ;;  %v1119_v45 = vsel %vm359_vm7, %v1095_v35, -inf }
 0xe85   :  { %v1113_v61 = vsel %vm359_vm7, %v1087_v27, -inf }
 0xe87   :  { %1114 = vmax.xlane.f32.xlu0 %v1113_v61 }
 0xe88   :  { %1117 = vmax.xlane.f32.xlu1 %v1116_v62 }
 0xe8b   :  { %1120 = vmax.xlane.f32.xlu0 %v1119_v45 }
 0xe99   :  { %1190 = vrot.lane.b32.xlu1 %v2661_v11, %s2305_s28 }
 0xf08   :  { %v1106_v47 = vpop.xlane.xlu0 %1105 }
 0xf09   :  { %v1124_v52 = vsub.f32 %v1076_v37, %v1106_v47  ;;  %v1100_v63 = vpop.xlane.xlu1 %1099 }
 0xf0a   :  { %v1122_v1 = vsub.f32 %v1068_v39, %v1100_v63 }
 0xf0b   :  { %v1134_v2 = vmul.f32 1.442695, %v1124_v52 }
 0xf0c   :  { %v1130_v4 = vmul.f32 1.442695, %v1122_v1  ;;  %v1103_v54 = vpop.xlane.xlu0 %1102 }
 0xf0d   :  { %2236 = vpow2.f32 %v1134_v2  ;;  %v1123_v57 = vsub.f32 %v1071_v44, %v1103_v54 }
 0xf0e   :  { %2238 = vpow2.f32 %v1130_v4 }
 0xf0f   :  { %v1132_v7 = vmul.f32 1.442695, %v1123_v57 }
 0xf10   :  { %v1109_v5 = vpop.xlane.xlu0 %1108 }
 0xf11   :  { %v1125_v6 = vsub.f32 %v1079_v51, %v1109_v5  ;;  %v1112_v50 = vpop.xlane.xlu1 %1111 }
 0xf12   :  { %v1126_v9 = vsub.f32 %v1084_v55, %v1112_v50 }
 0xf13   :  { %v1136_v8 = vmul.f32 1.442695, %v1125_v6 }
 0xf14   :  { %v1115_v10 = vpop.xlane.xlu0 %1114  ;;  %v1138_v16 = vmul.f32 1.442695, %v1126_v9 }
 0xf15   :  { %2240 = vpow2.f32 %v1136_v8  ;;  %v1118_v12 = vpop.xlane.xlu1 %1117  ;;  %v1127_v14 = vsub.f32 %v1087_v27, %v1115_v10  ;;  %v2180_v8 = vld [vmem:[%s2868_s7 + $0x10] sm:$0xff]   ;;  %v2181_v10 = vld [vmem:[%s2868_s7 + $0x18] sm:$0xff]  }
 0xf16   :  { %v1128_v11 = vsub.f32 %v1092_v59, %v1118_v12  ;;  %2242 = vpow2.f32 %v1132_v7 }
 0xf17   :  { %v2717_v13 = vpop.eup %2236  ;;  %v1140_v26 = vmul.f32 1.442695, %v1127_v14 }
 0xf18   :  { %v1142_v17 = vmul.f32 1.442695, %v1128_v11  ;;  %v1121_v18 = vpop.xlane.xlu0 %1120  ;;  %v1152_v42 = vsel %vm359_vm7, %v2717_v13, 0.0  ;;  %v2239_v31 = vpop.eup %2238 }
 0xf19   :  { %v1129_v32 = vsub.f32 %v1095_v35, %v1121_v18  ;;  %1153 = vadd.xlane.f32.xlu1 %v1152_v42  ;;  %v1191_v25 = vpop.permute.xlu1 %1190  ;;  %v1146_v28 = vsel %vm359_vm7, %v2239_v31, 0.0 }
 0xf1a   :  { %2244 = vpow2.f32 %v1142_v17  ;;  %2032 = vmatprep.subr.bf16.mxu0 %v1191_v25 }
 0xf1b   :  { %v1144_v23 = vmul.f32 1.442695, %v1129_v32  ;;  %2033 = vmatpush3.bf16.msra.mxu0 %v1191_v25  ;;  %2246 = vpow2.f32 %v1138_v16 }
 0xf1d   :  { %2248 = vpow2.f32 %v1144_v23  ;;  %1147 = vadd.xlane.f32.xlu1 %v1146_v28 }
 0xf1e   :  { %2250 = vpow2.f32 %v1140_v26 }
 0xf1f   :  { %v2241_v29 = vpop.eup %2240 }
 0xf20   :  { %v1155_v30 = vsel %vm359_vm7, %v2241_v29, 0.0  ;;  %v2243_v33 = vpop.eup %2242 }
 0xf21   :  { %1156 = vadd.xlane.f32.xlu0 %v1155_v30  ;;  %v1149_v36 = vsel %vm359_vm7, %v2243_v33, 0.0 }
 0xf24   :  { %v2723_v34 = vpop.eup %2244 }
 0xf25   :  { %1150 = vadd.xlane.f32.xlu0 %v1149_v36  ;;  %v1164_v37 = vsel %vm359_vm7, %v2723_v34, 0.0  ;;  %v2247_v38 = vpop.eup %2246 }
 0xf26   :  { %1165 = vadd.xlane.f32.xlu1 %v1164_v37  ;;  %v1158_v43 = vsel %vm359_vm7, %v2247_v38, 0.0 }
 0xf27   :  { %v2249_v39 = vpop.eup %2248 }
 0xf28   :  { %v1167_v40 = vsel %vm359_vm7, %v2249_v39, 0.0  ;;  %v2251_v41 = vpop.eup %2250 }
 0xf29   :  { %1168 = vadd.xlane.f32.xlu0 %v1167_v40  ;;  %v1161_v44 = vsel %vm359_vm7, %v2251_v41, 0.0 }
 0xf2a   :  { %1159 = vadd.xlane.f32.xlu1 %v1158_v43 }
 0xf2d   :  { %1162 = vadd.xlane.f32.xlu0 %v1161_v44 }
 0xf3b   :  { %1194 = vrot.lane.b32.xlu1 %v2670_v20, %s2305_s28 }
 0xf3f   :  { %1196 = vrot.lane.b32.xlu1 %v2678_v24, %s2305_s28 }
 0xf43   :  { %1192 = vrot.lane.b32.xlu0 %v2672_v21, %s2305_s28 }
 0xfa6   :  { %v1154_v46 = vpop.xlane.xlu1 %1153 }
 0xfaa   :  { %v1148_v48 = vpop.xlane.xlu1 %1147 }
 0xfab   :  { %2252 = vrcp.f32 %v1148_v48 }
 0xfae   :  { %v1157_v51 = vpop.xlane.xlu0 %1156 }
 0xfb2   :  { %v1151_v53 = vpop.xlane.xlu0 %1150 }
 0xfb3   :  { %2254 = vrcp.f32 %v1151_v53  ;;  %v1166_v19 = vpop.xlane.xlu1 %1165 }
 0xfb4   :  { %2256 = vrcp.f32 %v1157_v51 }
 0xfb5   :  { %2258 = vrcp.f32 %v1154_v46  ;;  %v2253_v20 = vpop.eup %2252  ;;  %v1840_v46 = vld [vmem:[%s2869_s8 + $0x1] ss:$0 sm:$0xff] }
 0xfb6   :  { %v1169_v55 = vpop.xlane.xlu0 %1168  ;;  %v1171_v27 = vmul.f32 %v2253_v20, %v2239_v31 }
 0xfb7   :  { %v1160_v22 = vpop.xlane.xlu1 %1159 }
 0xfb8   :  { %2260 = vrcp.f32 %v1160_v22 }
 0xfba   :  { %v1163_v56 = vpop.xlane.xlu0 %1162 }
 0xfbb   :  { %2262 = vrcp.f32 %v1163_v56  ;;  %v1195_v24 = vpop.permute.xlu1 %1194 }
 0xfbc   :  { %2264 = vrcp.f32 %v1169_v55 }
 0xfbd   :  { %v2255_v58 = vpop.eup %2254  ;;  %2266 = vrcp.f32 %v1166_v19 }
 0xfbe   :  { %v1193_v59 = vpop.permute.xlu0 %1192  ;;  %v1173_v21 = vmul.f32 %v2255_v58, %v2243_v33  ;;  %v2257_v61 = vpop.eup %2256 }
 0xfbf   :  { %2034 = vmatprep.subr.bf16.mxu0 %v1193_v59  ;;  %v2259_v35 = vpop.eup %2258  ;;  %v1197_v45 = vpop.permute.xlu1 %1196  ;;  %v1177_v52 = vmul.f32 %v2257_v61, %v2241_v29 }
 0xfc0   :  { %2035 = vmatpush3.bf16.msra.mxu0 %v1193_v59  ;;  %v1186_v60 = vpack.c.bf16 %v1173_v21, %v1171_v27  ;;  %v1175_v1 = vmul.f32 %v2259_v35, %v2717_v13 }
 0xfc1   :  { %2036 = vmatprep.subr.bf16.mxu0 %v1195_v24 }
 0xfc2   :  { %2040 = vmatprep.mubr.msk.bf16.mxu0 %vm359_vm7, %v1186_v60  ;;  %v2261_v62 = vpop.eup %2260  ;;  %v1187_v4 = vpack.c.bf16 %v1177_v52, %v1175_v1  ;;  %v2183_v52 = vld [vmem:[%s2872_s11 + $0x18] sm:$0xff]  }
 0xfc3   :  { %v1179_v2 = vmul.f32 %v2261_v62, %v2247_v38 }
 0xfc4   :  { %2037 = vmatpush3.bf16.msra.mxu0 %v1195_v24 }
 0xfc5   :  { %v2263_v47 = vpop.eup %2262  ;;  %2038 = vmatprep.subr.bf16.mxu0 %v1197_v45 }
 0xfc6   :  { %v1181_v63 = vmul.f32 %v2263_v47, %v2251_v41  ;;  %v2265_v54 = vpop.eup %2264 }
 0xfc7   :  { %v2267_v5 = vpop.eup %2266  ;;  %v1185_v6 = vmul.f32 %v2265_v54, %v2249_v39 }
 0xfc8   :  { %2039 = vmatpush3.bf16.msra.mxu0 %v1197_v45  ;;  %v1188_v57 = vpack.c.bf16 %v1181_v63, %v1179_v2  ;;  %v1183_v50 = vmul.f32 %v2267_v5, %v2723_v34 }
 0xfc9   :  { %2048 = vmatprep.subr.bf16.mxu0 %v2298_v15 }
 0xfca   :  { %v1189_v7 = vpack.c.bf16 %v1185_v6, %v1183_v50  ;;  %v1846_v50 = vld [vmem:[%s2870_s9 + $0x1] ss:$0 sm:$0xff] }
 0xfcb   :  { %2041 = vmatmul.mubr.msk.bf16.vlgmr.msra.gmra.mrb[24].mxu0 %vm359_vm7, %v1187_v4 }
 0xfcc   :  { %2044 = vmatprep.mubr.msk.bf16.mxu0 %vm359_vm7, %v1188_v57  ;;  %2049 = vmatpush3.bf16.msra.mxu0 %v2180_v8 }
 0xfcd   :  { %2050 = vmatprep.subr.bf16.mxu0 %v2298_v15 }
 0xfd0   :  { %2051 = vmatpush3.bf16.msra.mxu0 %v2181_v10  ;;  %v1847_v10 = vld [vmem:[%s2871_s10 + $0x1] ss:$0 sm:$0xff] }
 0xfd1   :  { %2056 = vmatprep.subr.bf16.mxu0 %v2298_v15 }
 0xfd3   :  { %2045 = vmatmul.mubr.msk.bf16.gmra.mrb[28].mxu0 %vm359_vm7, %v1189_v7 }
 0xfd4   :  { %2052 = vmatprep.mubr.msk.bf16.mxu0 %vm2299_vm1, %v2298_v15 }
0x109e   :  { %v2042_v9 = vpop.f32.mrb[24].mxu0 }
0x109f   :  { %v1248_v12 = vpop.f32.mrb[25].mxu0 }
0x10a0   :  { %v2043_v11 = vpop.f32.mrb[26].mxu0 }
0x10a1   :  { %v2152_v13 = vpack.i.bf16 %v2043_v11, %v2042_v9  ;;  %v1251_v14 = vpop.f32.mrb[27].mxu0 }
0x10a3   :  { %2153 = vrot.lane.b32.xlu1 %v2152_v13, %s2306_s21 }
0x10a6   :  { %v2046_v16 = vpop.f32.mrb[28].mxu0 }
0x10a7   :  { %v1264_v17 = vpop.f32.mrb[29].mxu0 }
0x10a8   :  { %v2047_v18 = vpop.f32.mrb[30].mxu0 }
0x10a9   :  { %v2162_v42 = vpack.i.bf16 %v2047_v18, %v2046_v16  ;;  %v1267_v31 = vpop.f32.mrb[31].mxu0  ;;  %v2184_v16 = vld [vmem:[%s2874_s13 + $0x20] sm:$0xff]   ;;  %v2186_v18 = vld [vmem:[%s2874_s13 + $0x30] sm:$0xff]  }
0x10aa   :  { %v2157_v32 = vpack.i.bf16 %v1267_v31, %v1264_v17  ;;  %2065 = vmatpush3.bf16.msra.mxu1 %v2184_v16  ;;  %v2185_v17 = vld [vmem:[%s2874_s13 + $0x28] sm:$0xff]   ;;  %v1853_v31 = vld [vmem:[%s2873_s12 + $0x1] ss:$0 sm:$0xff] }
0x10ab   :  { %2163 = vrot.lane.b32.xlu1 %v2162_v42, %s2307_s1  ;;  %2066 = vmatprep.subr.bf16.mxu1 %v2298_v15  ;;  %v2187_v42 = vld [vmem:[%s2874_s13 + $0x38] sm:$0xff]  }
0x10ac   :  { %2158 = vrot.lane.b32.xlu0 %v2157_v32, %s2893_s25 }
0x10ae   :  { %2067 = vmatpush3.bf16.msra.mxu1 %v2185_v17 }
0x10af   :  { %2068 = vmatprep.subr.bf16.mxu1 %v2298_v15 }
0x10b2   :  { %2069 = vmatpush3.bf16.msra.mxu1 %v2186_v18 }
0x10b3   :  { %2070 = vmatprep.subr.bf16.mxu1 %v2298_v15 }
0x10b6   :  { %2071 = vmatpush3.bf16.msra.mxu1 %v2187_v42  ;;  %v1875_v42 = vld [vmem:[%s2877_s16 + $0x1] ss:$0 sm:$0xff] }
0x1115   :  { %v2154_v25 = vpop.permute.xlu1 %2153 }
0x1116   :  { %v2156_v26 = vunpack.i.h.bf16 %v2154_v25  ;;  %v2155_v23 = vunpack.i.l.bf16 %v2154_v25 }
0x1118   :  { %v1303_v34 = vsel %vm269_vm2, %v1248_v12, %v2155_v23  ;;  %v1304_v36 = vsel %vm269_vm2, %v1251_v14, %v2156_v26 }
0x111d   :  { %v2164_v28 = vpop.permute.xlu1 %2163 }
0x111e   :  { %v2159_v29 = vpop.permute.xlu0 %2158  ;;  %v2166_v37 = vunpack.i.h.bf16 %v2164_v28  ;;  %v2165_v38 = vunpack.i.l.bf16 %v2164_v28 }
0x111f   :  { %v2161_v30 = vunpack.i.h.bf16 %v2159_v29  ;;  %v2160_v33 = vunpack.i.l.bf16 %v2159_v29 }
0x1121   :  { %v1306_v39 = vsel %vm567_vm12, %v1304_v36, %v2161_v30  ;;  %v1305_v40 = vsel %vm567_vm12, %v1303_v34, %v2160_v33 }
0x1122   :  { %v1308_v41 = vsel %vm570_vm13, %v1306_v39, %v2166_v37  ;;  %v1307_v43 = vsel %vm570_vm13, %v1305_v40, %v2165_v38 }
0x1123   :  { %v1309_v44 = vpack.c.bf16 %v1308_v41, %v1307_v43 }
0x1125   :  { %2053 = vmatmul.mubr.msk.bf16.vlgmr.msra.gmra.mrb[32].mxu0 %vm70_vm0, %v1309_v44 }
0x1126   :  { %2060 = vmatprep.mubr.msk.bf16.mxu0 %vm2299_vm1, %v2298_v15 }
0x11f8   :  { %v1372_v48 = vpop.f32.mrb[32].mxu0 }
0x11f9   :  { %v1373_v51 = vadd.f32 %v1840_v46, %v1372_v48  ;;  %v2054_v53 = vpop.f32.mrb[33].mxu0 }
0x11fa   :  { %v1375_v19 = vpop.f32.mrb[34].mxu0 }
0x11fb   :  { %v1376_v55 = vadd.f32 %v1840_v46, %v1375_v19  ;;  %v2055_v22 = vpop.f32.mrb[35].mxu0  ;;  %v1379_v56 = vadd.f32 %v1373_v51, %v2651_v3 }
0x11fd   :  { %v1385_v20 = vsel %vm70_vm0, %v1379_v56, 0.0  ;;  %v1380_v58 = vadd.f32 %v1376_v55, %v2653_v49  ;;  %v2182_v49 = vld [vmem:[%s2872_s11 + $0x10] sm:$0xff]   ;;  %s2286_s11 = scalar_lea.hbm %s2881_s20, 16 }
0x11fe   :  { %1386 = vadd.xlane.f32.xlu0 %v1385_v20  ;;  %2057 = vmatpush3.bf16.msra.mxu0 %v2182_v49  ;;  %v1866_v20 = vld [vmem:[%s2875_s14 + $0x1] ss:$0 sm:$0xff]  ;;  %p2287_p0 = scmp.ne.s32.totalorder %s2881_s20, %s2286_s11  ;;  %p2290_p1 = scmp.lt.u32.totalorder %s2286_s11, %s2881_s20 }
0x11ff   :  { %v1388_v24 = vsel %vm70_vm0, %v1380_v58, 0.0  ;;  %2058 = vmatprep.subr.bf16.mxu0 %v2298_v15 }
0x1200   :  { %1389 = vadd.xlane.f32.xlu1 %v1388_v24  ;;  %p2292_p2 = pnand %p2290_p1, %p2287_p0 }
0x1202   :  { %2059 = vmatpush3.bf16.msra.mxu0 %v2183_v52 }
0x1203   :  { %2076 = vmatprep.subr.bf16.mxu0 %v2298_v15 }
0x128b   :  { %v1387_v59 = vpop.xlane.xlu0 %1386 }
0x128c   :  { %v1391_v27 = vmul.f32 0.03125, %v1387_v59 }
0x128d   :  { %v1390_v21 = vpop.xlane.xlu1 %1389 }
0x128e   :  { %v1393_v60 = vsub.f32 %v1379_v56, %v1391_v27  ;;  %v1392_v61 = vmul.f32 0.03125, %v1390_v21 }
0x1290   :  { %v1394_v35 = vsub.f32 %v1380_v58, %v1392_v61  ;;  %v1395_v62 = vmul.f32 %v1393_v60, %v1393_v60 }
0x1292   :  { %v1397_v45 = vsel %vm70_vm0, %v1395_v62, 0.0  ;;  %v1396_v47 = vmul.f32 %v1394_v35, %v1394_v35 }
0x1293   :  { %1398 = vadd.xlane.f32.xlu0 %v1397_v45 }
0x1294   :  { %v1400_v3 = vsel %vm70_vm0, %v1396_v47, 0.0 }
0x1297   :  { %1401 = vadd.xlane.f32.xlu0 %v1400_v3 }
0x1320   :  { %v1399_v63 = vpop.xlane.xlu0 %1398 }
0x1321   :  { %v1403_v1 = vmul.f32 0.03125, %v1399_v63 }
0x1323   :  { %v1405_v2 = vadd.f32 1e-12, %v1403_v1 }
0x1324   :  { %v1402_v4 = vpop.xlane.xlu0 %1401 }
0x1325   :  { %2268 = vrsqrt.f32 %v1405_v2  ;;  %v1404_v54 = vmul.f32 0.03125, %v1402_v4 }
0x1327   :  { %v1406_v57 = vadd.f32 1e-12, %v1404_v54 }
0x1329   :  { %2270 = vrsqrt.f32 %v1406_v57 }
0x132f   :  { %v2269_v5 = vpop.eup %2268 }
0x1330   :  { %v1409_v6 = vmul.f32 %v2269_v5, %v1393_v60  ;;  %v1651_v5 = vld [vmem:[%s2879_s18] sm:$0x1f] }
0x1332   :  { %v1417_v8 = vmul.f32 %v1846_v50, %v1409_v6  ;;  %v2309_v6 = vmov 0  }
0x1333   :  { %v2271_v7 = vpop.eup %2270  ;;  %2167 = vset.pattern.permute.xlu0 %v2309_v6 }
0x1334   :  { %v1410_v9 = vmul.f32 %v2271_v7, %v1394_v35  ;;  %v1425_v11 = vadd.f32 %v1847_v10, %v1417_v8 }
0x1336   :  { %v1418_v12 = vmul.f32 %v1846_v50, %v1410_v9 }
0x1338   :  { %v1426_v13 = vadd.f32 %v1847_v10, %v1418_v12 }
0x133a   :  { %v1427_v14 = vpack.c.bf16 %v1426_v13, %v1425_v11 }
0x133c   :  { %2061 = vmatmul.mubr.msk.bf16.vlgmr.msra.gmra.mrb[36].mxu0 %vm70_vm0, %v1427_v14 }
0x133d   :  { %2078 = vmatprep.mubr.msk.bf16.mxu0 %vm2299_vm1, %v2298_v15  ;;  %vm1703_vm1 = vcmask 126976  }
0x140f   :  { %v1490_v32 = vpop.f32.mrb[36].mxu0 }
0x1410   :  { %v1491_v25 = vadd.f32 %v1853_v31, %v1490_v32  ;;  %v2062_v26 = vpop.f32.mrb[37].mxu0 }
0x1411   :  { %v1493_v23 = vpop.f32.mrb[38].mxu0 }
0x1412   :  { %v1499_v28 = vmul.f32 0.044715, %v1491_v25  ;;  %v1494_v29 = vadd.f32 %v1853_v31, %v1493_v23  ;;  %v2063_v30 = vpop.f32.mrb[39].mxu0  ;;  %v1497_v51 = vmul.f32 0.5, %v1491_v25 }
0x1414   :  { %v1501_v33 = vmul.f32 %v1499_v28, %v1491_v25  ;;  %v1500_v34 = vmul.f32 0.044715, %v1494_v29  ;;  %v1498_v53 = vmul.f32 0.5, %v1494_v29  ;;  %v1649_v28 = vld [vmem:[%s2878_s17] sm:$0x7] }
0x1416   :  { %v1503_v36 = vmul.f32 %v1501_v33, %v1491_v25  ;;  %v1502_v37 = vmul.f32 %v1500_v34, %v1494_v29  ;;  %v1740_v34 = vsub.s32 0, %v2490_v0 }
0x1418   :  { %v1505_v38 = vadd.f32 %v1503_v36, %v1491_v25  ;;  %v1504_v39 = vmul.f32 %v1502_v37, %v1494_v29 }
0x141a   :  { %v1507_v40 = vmul.f32 0.7978846, %v1505_v38  ;;  %v1506_v41 = vadd.f32 %v1504_v39, %v1494_v29  ;;  %v1724_v29 = vld [vmem:[%s2894_s3] sm:$0x1] }
0x141b   :  { %vm1751_vm14 = vcmp.ne.s32.totalorder %v1724_v29, 4294967196  ;;  %v1741_v36 = vrot.slane %v1724_v29, %v1740_v34 }
0x141c   :  { %2272 = vtanh.f32 %v1507_v40  ;;  %v1508_v43 = vmul.f32 0.7978846, %v1506_v41  ;;  %v1877_v30 = vsel %vm1751_vm14, 1.0, %v2298_v15 }
0x141d   :  { %v1759_v33 = vsel %vm1722_vm15, %v1877_v30, 0.0  ;;  %vm1742_vm2 = vcmp.eq.s32.totalorder %v2490_v0, %v1741_v36 }
0x141e   :  { %2274 = vtanh.f32 %v1508_v43 }
0x1426   :  { %v2273_v44 = vpop.eup %2272 }
0x1427   :  { %v1511_v46 = vadd.f32 1.0, %v2273_v44 }
0x1428   :  { %v2275_v48 = vpop.eup %2274 }
0x1429   :  { %v1512_v19 = vadd.f32 1.0, %v2275_v48  ;;  %v1513_v55 = vmul.f32 %v1511_v46, %v1497_v51 }
0x142b   :  { %v1514_v22 = vmul.f32 %v1512_v19, %v1498_v53 }
0x142d   :  { %v1515_v56 = vpack.c.bf16 %v1514_v22, %v1513_v55  ;;  %v1711_v55 = vcvt.s32.f32 %v2490_v0 }
0x142f   :  { %2073 = vmatmul.mubr.msk.bf16.vlgmr.msra.gmra.mrb[20].mxu1 %vm359_vm7, %v1515_v56 }
0x1502   :  { %v1594_v58 = vpop.f32.mrb[20].mxu1 }
0x1503   :  { %v1595_v24 = vadd.f32 %v1866_v20, %v1594_v58  ;;  %v2074_v59 = vpop.f32.mrb[21].mxu1 }
0x1504   :  { %v1597_v27 = vpop.f32.mrb[22].mxu1 }
0x1505   :  { %v1598_v21 = vadd.f32 %v1866_v20, %v1597_v27  ;;  %v2075_v60 = vpop.f32.mrb[23].mxu1  ;;  %v1601_v61 = vadd.f32 %v1595_v24, %v1425_v11 }
0x1507   :  { %v1607_v35 = vsel %vm70_vm0, %v1601_v61, 0.0  ;;  %v1602_v62 = vadd.f32 %v1598_v21, %v1426_v13  ;;  %v1874_v13 = vld [vmem:[%s2876_s15 + $0x1] ss:$0 sm:$0xff] }
0x1508   :  { %1608 = vadd.xlane.f32.xlu0 %v1607_v35 }
0x1509   :  { %v1610_v45 = vsel %vm70_vm0, %v1602_v62, 0.0 }
0x150a   :  { %1611 = vadd.xlane.f32.xlu1 %v1610_v45 }
0x1595   :  { %v1609_v47 = vpop.xlane.xlu0 %1608 }
0x1596   :  { %v1613_v3 = vmul.f32 0.03125, %v1609_v47 }
0x1597   :  { %v1612_v49 = vpop.xlane.xlu1 %1611 }
0x1598   :  { %v1615_v52 = vsub.f32 %v1601_v61, %v1613_v3  ;;  %v1614_v63 = vmul.f32 0.03125, %v1612_v49 }
0x159a   :  { %v1616_v1 = vsub.f32 %v1602_v62, %v1614_v63  ;;  %v1617_v2 = vmul.f32 %v1615_v52, %v1615_v52 }
0x159c   :  { %v1619_v4 = vsel %vm70_vm0, %v1617_v2, 0.0  ;;  %v1618_v54 = vmul.f32 %v1616_v1, %v1616_v1 }
0x159d   :  { %1620 = vadd.xlane.f32.xlu0 %v1619_v4 }
0x159e   :  { %v1622_v57 = vsel %vm70_vm0, %v1618_v54, 0.0 }
0x159f   :  { %1623 = vadd.xlane.f32.xlu1 %v1622_v57 }
0x15a3   :  { %1760 = vadd.xlane.f32.xlu1 %v1759_v33 }
0x15b3   :  { %1654 = vperm.xlu0 %2167, %v1651_v5  }
0x162a   :  { %v1621_v50 = vpop.xlane.xlu0 %1620 }
0x162b   :  { %v1625_v7 = vmul.f32 0.03125, %v1621_v50 }
0x162c   :  { %v1624_v8 = vpop.xlane.xlu1 %1623 }
0x162d   :  { %v1627_v9 = vadd.f32 1e-12, %v1625_v7  ;;  %v1626_v10 = vmul.f32 0.03125, %v1624_v8 }
0x162f   :  { %2276 = vrsqrt.f32 %v1627_v9  ;;  %v1628_v12 = vadd.f32 1e-12, %v1626_v10 }
0x1631   :  { %2278 = vrsqrt.f32 %v1628_v12 }
0x1632   :  { %v1655_v37 = vpop.permute.xlu0 %1654 }
0x1639   :  { %v2277_v11 = vpop.eup %2276 }
0x163a   :  { %v1631_v14 = vmul.f32 %v2277_v11, %v1615_v52 }
0x163b   :  { %v2279_v16 = vpop.eup %2278 }
0x163c   :  { %v1632_v17 = vmul.f32 %v2279_v16, %v1616_v1  ;;  %v1639_v18 = vmul.f32 %v1874_v13, %v1631_v14  ;;  %v1761_v14 = vpop.xlane.xlu1 %1760 }
0x163d   :  { %v1762_v16 = vmax.f32 %v1761_v14, 1.0 }
0x163e   :  { %v1640_v31 = vmul.f32 %v1874_v13, %v1632_v17  ;;  %v1647_v32 = vadd.f32 %v1875_v42, %v1639_v18 }
0x1640   :  { %v1648_v25 = vadd.f32 %v1875_v42, %v1640_v31 }
0x1642   :  { %v1650_v26 = vpack.c.bf16 %v1648_v25, %v1647_v32 }
0x1644   :  { %v1661_v23 = vsel %vm70_vm0, %v1650_v26, 0 }
0x1645   :  { %2077 = vmatpush3.bf16.xpose.msra.mxu0 %v1661_v23 }
0x164c   :  { %2079 = vmatmul.mubr.msk.bf16.vlgmr.msra.gmra.mrb[40].mxu0 %vm70_vm0, %v1649_v28 }
0x171f   :  { %v1697_v38 = vpop.f32.mrb[40].mxu0 }
0x1720   :  { %v1698_v39 = vadd.f32 %v1697_v38, %v1655_v37  ;;  %v2080_v40 = vpop.f32.mrb[41].mxu0 }
0x1721   :  { %v1700_v41 = vpop.f32.mrb[42].mxu0 }
0x1722   :  { %v1704_v43 = vsel %vm1703_vm1, %v1698_v39, -inf  ;;  %v2081_v44 = vpop.f32.mrb[43].mxu0  ;;  %v1743_v46 = vsel %vm1742_vm2, %v1698_v39, 0.0 }
0x1723   :  { %v1705_v48 = vrot.slane %v1704_v43, 4  ;;  %v1744_v49 = vsel %vm1703_vm1, %v1743_v46, 0.0 }
0x1724   :  { %v1745_v1 = vrot.slane %v1744_v49, 4 }
0x1725   :  { %v1706_v15 = vmax.f32 %v1704_v43, %v1705_v48 }
0x1726   :  { %v1746_v54 = vadd.f32 %v1745_v1, %v1744_v49 }
0x1727   :  { %v1707_v51 = vrot.slane %v1706_v15, 2 }
0x1728   :  { %v1747_v5 = vrot.slane %v1746_v54, 2 }
0x1729   :  { %v1708_v53 = vmax.f32 %v1706_v15, %v1707_v51 }
0x172a   :  { %v1748_v6 = vadd.f32 %v1747_v5, %v1746_v54 }
0x172b   :  { %v1709_v19 = vrot.slane %v1708_v53, 1 }
0x172c   :  { %v1749_v50 = vrot.slane %v1748_v6, 1 }
0x172d   :  { %v1710_v22 = vmax.f32 %v1708_v53, %v1709_v19 }
0x172e   :  { %v1750_v10 = vadd.f32 %v1749_v50, %v1748_v6 }
0x172f   :  { %vm1712_vm0 = vcmp.eq.f32.partialorder %v1698_v39, %v1710_v22  ;;  %v1725_v56 = vsub.f32 %v1698_v39, %v1710_v22 }
0x1730   :  { %v1713_v20 = vsel %vm1712_vm0, %v1711_v55, 5.0 }
0x1731   :  { %v1714_v58 = vsel %vm1703_vm1, %v1713_v20, inf  ;;  %v1726_v24 = vmul.f32 1.442695, %v1725_v56 }
0x1732   :  { %v1715_v59 = vrot.slane %v1714_v58, 4 }
0x1733   :  { %2280 = vpow2.f32 %v1726_v24 }
0x1734   :  { %v1716_v27 = vmin.f32 %v1714_v58, %v1715_v59 }
0x1736   :  { %v1717_v21 = vrot.slane %v1716_v27, 2 }
0x1738   :  { %v1718_v60 = vmin.f32 %v1716_v27, %v1717_v21 }
0x173a   :  { %v1719_v61 = vrot.slane %v1718_v60, 1 }
0x173c   :  { %v1720_v35 = vmin.f32 %v1718_v60, %v1719_v61 }
0x173d   :  { %v2281_v62 = vpop.eup %2280 }
0x173e   :  { %v1728_v45 = vsel %vm1703_vm1, %v2281_v62, 0.0  ;;  %v2090_v47 = vtrunc.f32 %v1720_v35 }
0x173f   :  { %v1729_v3 = vrot.slane %v1728_v45, 4 }
0x1740   :  { %v2091_v0 = vcvt.f32.s32 %v2090_v47 }
0x1741   :  { %v1730_v52 = vadd.f32 %v1729_v3, %v1728_v45 }
0x1742   :  { %1723 = vst.msk [vmem:[%s2880_s19] sm:$0x1] %vm1722_vm15, %v2091_v0 }
0x1743   :  { %v1731_v63 = vrot.slane %v1730_v52, 2 }
0x1745   :  { %v1732_v2 = vadd.f32 %v1731_v63, %v1730_v52 }
0x1747   :  { %v1733_v4 = vrot.slane %v1732_v2, 1 }
0x1749   :  { %v1734_v57 = vadd.f32 %v1733_v4, %v1732_v2 }
0x174b   :  { %2282 = vlog2.f32 %v1734_v57 }
0x174c   :  { %2284 = vrcp.f32 %v1762_v16 }
0x1755   :  { %v2283_v7 = vpop.eup %2282 }
0x1756   :  { %v1736_v8 = vmul.f32 0.6931472, %v2283_v7  ;;  %v2285_v17 = vpop.eup %2284 }
0x1758   :  { %v1737_v9 = vadd.f32 %v1736_v8, %v1710_v22 }
0x175a   :  { %v1754_v12 = vsub.f32 %v1737_v9, %v1750_v10 }
0x175c   :  { %v1755_v11 = vmul.f32 %v1877_v30, %v1754_v12 }
0x175e   :  { %v1756_v13 = vsel %vm1722_vm15, %v1755_v11, 0.0 }
0x175f   :  { %1757 = vadd.xlane.f32.xlu1 %v1756_v13 }
0x17ec   :  { %v1758_v18 = vpop.xlane.xlu1 %1757 }
0x17ed   :  { %v1764_v42 = vmul.f32 %v2285_v17, %v1758_v18 }
0x17ef   :  { %2092 = vpush %v1764_v42 }
0x1820   :  { %s2093_s19 = spop %2092 }
0x1821   :  { %1767 = sst [smem:[#allocation2]] %s2093_s19 }
0x1822   :  { %2295 = shalt.err (!%p2292_p2)
}
0x1823   :  { %s2310_s22 = smov [#allocation2]  }
0x1824   :  { %1777 = dma.smem_to_hbm %s2310_s22, 16, %s2881_s20, [#allocation3]  }
0x1825   :  { %2296 = dma.done.wait [#allocation3], 16  }
0x1826   :  { %2297 = vsyncadd [#allocation3], 4294967280 }
0x1827   :  { %1783 = sfence }
0x1828   :  { %1784 = vsyncpa [#allocation3], 1 }

</bundles_post_ra>
